<compile_context>
chip_gen: v5e
topology: v5e:2x2
jax: 0.10.0
libtpu: 0.0.40
codegen_flags: <defaults>
</compile_context>

<pallas_src>
import jax
import jax.numpy as jnp
from jax.experimental import pallas as pl
from jax.experimental.pallas import tpu as pltpu


def _global_avgpool_kernel(x_ref, o_ref):
    """Global 7x7 average pool for one batch tile.

    x_ref : (TB, C, S)  input feature map tile (S = 7*7 = 49 spatial positions)
    o_ref : (TB, C)     pooled features (lane axis = C)
    """
    x = x_ref[...].astype(jnp.float32)
    inv_s = 1.0 / x.shape[-1]                      # compile-time constant
    o_ref[...] = (jnp.sum(x, axis=-1) * inv_s).astype(o_ref.dtype)


def custom_visual_forward(visual_features, *, batch_tile=8):
    """Pallas-backed CustomVisual.forward tail.

    visual_features : (B, C, 7, 7) backbone feature map.
    Returns (visual_features, avg_features) where avg_features is (B, C)
    (squeezed to (C,) when B == 1, matching torch .squeeze()).
    """
    B, C, H, W = visual_features.shape
    if (H, W) != (7, 7):
        # AvgPool2d(kernel=7, stride=1, pad=0) on the DenseNet201 7x7 map is a
        # global pool; that is the only case this kernel implements.
        raise NotImplementedError("kernel implements the 7x7 global-pool case")
    S = H * W

    # Free, contiguous reshape (no copy): (B, C, 7, 7) -> (B, C, 49).
    x = visual_features.reshape(B, C, S)

    # Batch tile: 8 sublanes when possible; full batch when B < 8 so the
    # output block equals the full array dims (no (8,128) divisibility issue).
    tb = batch_tile if B >= batch_tile else B
    grid = (pl.cdiv(B, tb),)

    itemsize = jnp.dtype(visual_features.dtype).itemsize
    avg = pl.pallas_call(
        _global_avgpool_kernel,
        out_shape=jax.ShapeDtypeStruct((B, C), visual_features.dtype),
        grid=grid,
        in_specs=[pl.BlockSpec((tb, C, S), lambda b: (b, 0, 0))],
        out_specs=pl.BlockSpec((tb, C), lambda b: (b, 0)),
        compiler_params=pltpu.CompilerParams(
            dimension_semantics=("parallel",),
            vmem_limit_bytes=32 * 1024 * 1024),
        cost_estimate=pl.CostEstimate(
            flops=B * C * S,
            transcendentals=0,
            bytes_accessed=B * C * S * itemsize + B * C * itemsize),
    )(x)

    avg_features = avg
    if B == 1:                       # torch .squeeze() also drops the batch dim
        avg_features = jnp.squeeze(avg_features, axis=0)
    return visual_features, avg_features


if __name__ == "__main__":
    # Small shapes consistent with the module: DenseNet201 produces a
    # (B, 1920, 7, 7) feature map; use a reduced channel count here.
    B, C, H, W = 2, 256, 7, 7

    key = jax.random.PRNGKey(0)
    visual_features = jax.random.normal(key, (B, C, H, W), dtype=jnp.float32)

    vf, avg_features = custom_visual_forward(visual_features)
    vf = jax.block_until_ready(vf)
    avg_features = jax.block_until_ready(avg_features)

    # Pure-JAX reference: AvgPool2d(7, stride=1, pad=0) on a 7x7 map == global mean.
    ref_avg = jnp.mean(visual_features, axis=(2, 3))

    assert vf.shape == (B, C, H, W)
    assert avg_features.shape == (B, C)
    assert jnp.allclose(vf, visual_features)
    assert jnp.allclose(avg_features, ref_avg, atol=1e-6, rtol=1e-6)

    print("KERNEL_OK")
</pallas_src>

<mosaic_0001>
module attributes {stable_mosaic.version = 11 : i64} {
  func.func @_global_avgpool_kernel(%arg0: i32, %arg1: memref<2x256x49xf32, #tpu.memory_space<vmem>>, %arg2: memref<2x256xf32, #tpu.memory_space<vmem>>) attributes {dimension_semantics = [#tpu.dimension_semantics<parallel>], iteration_bounds = array<i64: 1>, scalar_prefetch = 0 : i64, scratch_operands = 0 : i64, tpu.core_type = #tpu.core_type<tc>, window_params = [{transform_indices = @transform_0, window_bounds = array<i64: 2, 256, 49>}, {transform_indices = @transform_1, window_bounds = array<i64: 2, 256>}]} {
    %c0 = arith.constant 0 : index
    %c0_0 = arith.constant 0 : index
    %c0_1 = arith.constant 0 : index
    %0 = vector.load %arg1[%c0, %c0_0, %c0_1] : memref<2x256x49xf32, #tpu.memory_space<vmem>>, vector<2x256x49xf32>
    %cst = arith.constant dense<0.000000e+00> : vector<2x256xf32>
    %1 = vector.multi_reduction <add>, %0, %cst [2] : vector<2x256x49xf32> to vector<2x256xf32>
    %cst_2 = arith.constant 0.0204081628 : f32
    %2 = vector.broadcast %cst_2 : f32 to vector<2x256xf32>
    %3 = arith.mulf %1, %2 : vector<2x256xf32>
    %c0_3 = arith.constant 0 : index
    %c0_4 = arith.constant 0 : index
    %4 = vector.load %arg2[%c0_3, %c0_4] : memref<2x256xf32, #tpu.memory_space<vmem>>, vector<2x256xf32>
    tpu.vector_store %arg2[%c0_3, %c0_4], %3 {strides = array<i32>} : memref<2x256xf32, #tpu.memory_space<vmem>>, vector<2x256xf32>,
    return
  }
  func.func @transform_0(%arg0: i32) -> (i32, i32, i32) {
    %c0_i32 = arith.constant 0 : i32
    %c0_i32_0 = arith.constant 0 : i32
    %c0_i32_1 = arith.constant 0 : i32
    return %arg0, %c0_i32, %c0_i32_0 : i32, i32, i32
  }
  func.func @transform_1(%arg0: i32) -> (i32, i32) {
    %c0_i32 = arith.constant 0 : i32
    %c0_i32_0 = arith.constant 0 : i32
    return %arg0, %c0_i32 : i32, i32
  }
}

</mosaic_0001>

<bundles_post_ra>
// kernel: tpu_custom_call.1
= control target key start
LH: loop header
LB: loop body
LE: loop exit
PB: predicated region body
PF: predicated region fallthrough
CT: control target
= control target key end

     0   :  { %vm73_vm0 = vcmask 400384   ;;  %s3038_s0 = inlined_call_operand.vmem [shape: f32[2,256,49], index: 0, kind: input, shape index: {}]   ;;  %s3039_s1 = inlined_call_operand.hbm [shape: f32[2,256], index: 1, kind: output, shape index: {}]  }
   0x1   :  { %v13_v0 = vld [vmem:[%s3038_s0 + $0x20] sm:$0xff]  ;;  %v11_v1 = vld [vmem:[%s3038_s0 + $0x10] sm:$0xff]  ;;  %v14_v6 = vld [vmem:[%s3038_s0 + $0x28] sm:$0xff] }
   0x2   :  { %v9_v2 = vld [vmem:[%s3038_s0] sm:$0xff]  ;;  %v86_v3 = vsel %vm73_vm0, %v13_v0, 0.0  ;;  %v80_v4 = vsel %vm73_vm0, %v11_v1, 0.0  ;;  %v12_v7 = vld [vmem:[%s3038_s0 + $0x18] sm:$0xff]  ;;  %v10_v8 = vld [vmem:[%s3038_s0 + $0x8] sm:$0xff] }
   0x3   :  { %v74_v5 = vsel %vm73_vm0, %v9_v2, 0.0  ;;  %87 = vadd.xlane.f32.xlu2 %v86_v3  ;;  %81 = vadd.xlane.f32.xlu1 %v80_v4 }
   0x4   :  { %75 = vadd.xlane.f32.xlu0 %v74_v5 }
   0x5   :  { %6 = vsyncpa [#allocation3], 0  ;;  %v89_v9 = vsel %vm73_vm0, %v14_v6, 0.0  ;;  %v83_v10 = vsel %vm73_vm0, %v12_v7, 0.0  ;;  %v77_v11 = vsel %vm73_vm0, %v10_v8, 0.0  ;;  %v17_v12 = vld [vmem:[%s3038_s0 + $0x40] sm:$0xff] }
   0x6   :  { %v16_v13 = vld [vmem:[%s3038_s0 + $0x38] sm:$0xff]  ;;  %v15_v14 = vld [vmem:[%s3038_s0 + $0x30] sm:$0xff]  ;;  %v98_v15 = vsel %vm73_vm0, %v17_v12, 0.0  ;;  %v18_v20 = vld [vmem:[%s3038_s0 + $0x48] sm:$0xff]  ;;  %vm1942_vm1 = vcmask 130112   ;;  %vm1946_vm2 = vcmask 195712  }
   0x7   :  { %v95_v16 = vsel %vm73_vm0, %v16_v13, 0.0  ;;  %v92_v17 = vsel %vm73_vm0, %v15_v14, 0.0  ;;  %v20_v18 = vld [vmem:[%s3038_s0 + $0x58] sm:$0xff]  ;;  %v19_v19 = vld [vmem:[%s3038_s0 + $0x50] sm:$0xff]  ;;  %v101_v23 = vsel %vm73_vm0, %v18_v20, 0.0  ;;  %v22_v25 = vld [vmem:[%s3038_s0 + $0x68] sm:$0xff] }
   0x8   :  { %v107_v21 = vsel %vm73_vm0, %v20_v18, 0.0  ;;  %v104_v22 = vsel %vm73_vm0, %v19_v19, 0.0  ;;  %v23_v24 = vld [vmem:[%s3038_s0 + $0x70] sm:$0xff]  ;;  %v21_v26 = vld [vmem:[%s3038_s0 + $0x60] sm:$0xff]  ;;  %v113_v28 = vsel %vm73_vm0, %v22_v25, 0.0  ;;  %v26_v30 = vld [vmem:[%s3038_s0 + $0x88] sm:$0xff] }
   0x9   :  { %v116_v27 = vsel %vm73_vm0, %v23_v24, 0.0  ;;  %v110_v29 = vsel %vm73_vm0, %v21_v26, 0.0  ;;  %v25_v31 = vld [vmem:[%s3038_s0 + $0x80] sm:$0xff]  ;;  %v24_v32 = vld [vmem:[%s3038_s0 + $0x78] sm:$0xff]  ;;  %v125_v33 = vsel %vm73_vm0, %v26_v30, 0.0  ;;  %v27_v38 = vld [vmem:[%s3038_s0 + $0x90] sm:$0xff] }
   0xa   :  { %v122_v34 = vsel %vm73_vm0, %v25_v31, 0.0  ;;  %v119_v35 = vsel %vm73_vm0, %v24_v32, 0.0  ;;  %v29_v36 = vld [vmem:[%s3038_s0 + $0xa0] sm:$0xff]  ;;  %v28_v37 = vld [vmem:[%s3038_s0 + $0x98] sm:$0xff]  ;;  %v128_v41 = vsel %vm73_vm0, %v27_v38, 0.0  ;;  %v31_v43 = vld [vmem:[%s3038_s0 + $0xb0] sm:$0xff] }
   0xb   :  { %90 = vadd.xlane.f32.xlu2 %v89_v9  ;;  %84 = vadd.xlane.f32.xlu1 %v83_v10  ;;  %v134_v39 = vsel %vm73_vm0, %v29_v36, 0.0  ;;  %v131_v40 = vsel %vm73_vm0, %v28_v37, 0.0  ;;  %v32_v42 = vld [vmem:[%s3038_s0 + $0xb8] sm:$0xff]  ;;  %v30_v44 = vld [vmem:[%s3038_s0 + $0xa8] sm:$0xff]  ;;  %v140_v46 = vsel %vm73_vm0, %v31_v43, 0.0  ;;  %v35_v48 = vld [vmem:[%s3038_s0 + $0xd0] sm:$0xff] }
   0xc   :  { %78 = vadd.xlane.f32.xlu0 %v77_v11  ;;  %v143_v45 = vsel %vm73_vm0, %v32_v42, 0.0  ;;  %v137_v47 = vsel %vm73_vm0, %v30_v44, 0.0  ;;  %v34_v49 = vld [vmem:[%s3038_s0 + $0xc8] sm:$0xff]  ;;  %v33_v50 = vld [vmem:[%s3038_s0 + $0xc0] sm:$0xff]  ;;  %v152_v51 = vsel %vm73_vm0, %v35_v48, 0.0  ;;  %v36_v56 = vld [vmem:[%s3038_s0 + $0xd8] sm:$0xff] }
   0xd   :  { %v149_v52 = vsel %vm73_vm0, %v34_v49, 0.0  ;;  %v146_v53 = vsel %vm73_vm0, %v33_v50, 0.0  ;;  %v38_v54 = vld [vmem:[%s3038_s0 + $0xe8] sm:$0xff]  ;;  %v37_v55 = vld [vmem:[%s3038_s0 + $0xe0] sm:$0xff]  ;;  %v155_v59 = vsel %vm73_vm0, %v36_v56, 0.0  ;;  %v40_v61 = vld [vmem:[%s3038_s0 + $0xf8] sm:$0xff] }
   0xe   :  { %v161_v57 = vsel %vm73_vm0, %v38_v54, 0.0  ;;  %v158_v58 = vsel %vm73_vm0, %v37_v55, 0.0  ;;  %v41_v60 = vld [vmem:[%s3038_s0 + $0x100] sm:$0xff]  ;;  %v39_v62 = vld [vmem:[%s3038_s0 + $0xf0] sm:$0xff]  ;;  %v167_v0 = vsel %vm73_vm0, %v40_v61, 0.0  ;;  %v44_v2 = vld [vmem:[%s3038_s0 + $0x118] sm:$0xff] }
   0xf   :  { %v170_v63 = vsel %vm73_vm0, %v41_v60, 0.0  ;;  %v164_v1 = vsel %vm73_vm0, %v39_v62, 0.0  ;;  %v43_v3 = vld [vmem:[%s3038_s0 + $0x110] sm:$0xff]  ;;  %v42_v4 = vld [vmem:[%s3038_s0 + $0x108] sm:$0xff]  ;;  %v179_v5 = vsel %vm73_vm0, %v44_v2, 0.0  ;;  %v45_v10 = vld [vmem:[%s3038_s0 + $0x120] sm:$0xff] }
  0x10   :  { %v176_v6 = vsel %vm73_vm0, %v43_v3, 0.0  ;;  %v173_v7 = vsel %vm73_vm0, %v42_v4, 0.0  ;;  %v47_v8 = vld [vmem:[%s3038_s0 + $0x130] sm:$0xff]  ;;  %v46_v9 = vld [vmem:[%s3038_s0 + $0x128] sm:$0xff]  ;;  %v182_v13 = vsel %vm73_vm0, %v45_v10, 0.0  ;;  %v53_v20 = vld [vmem:[%s3038_s0 + $0x160] sm:$0xff] }
  0x11   :  { %v188_v11 = vsel %vm73_vm0, %v47_v8, 0.0  ;;  %v185_v12 = vsel %vm73_vm0, %v46_v9, 0.0  ;;  %v50_v14 = vld [vmem:[%s3038_s0 + $0x148] sm:$0xff]  ;;  %v2152_v26 = vmov 269488144   ;;  %v61_v4 = vld [vmem:[%s3038_s0 + $0x1a0] sm:$0xff] }
  0x12   :  { %v2154_v30 = vmov 1414812756   ;;  %v2155_v32 = vmov 1987475062   ;;  %v62_v3 = vld [vmem:[%s3038_s0 + $0x1a8] sm:$0xff]  ;;  %v230_v10 = vsel %vm73_vm0, %v61_v4, 0.0 }
  0x13   :  { %99 = vadd.xlane.f32.xlu2 %v98_v15  ;;  %96 = vadd.xlane.f32.xlu1 %v95_v16  ;;  %v49_v15 = vld [vmem:[%s3038_s0 + $0x140] sm:$0xff]  ;;  %v48_v16 = vld [vmem:[%s3038_s0 + $0x138] sm:$0xff]  ;;  %v403_v31 = vunpack.c.l.s4 %v2154_v30  ;;  %v233_v9 = vsel %vm73_vm0, %v62_v3, 0.0  ;;  %vm1950_vm3 = vcmask 261312   ;;  %vm1954_vm4 = vcmask 326912   ;;  %s2108_s21 = sshll.u32 %s3039_s1, 4  ;;  %s2109_s21 = int_to_ptr.hbm [resolvable:$true] %s2108_s21 }
  0x14   :  { %93 = vadd.xlane.f32.xlu0 %v92_v17  ;;  %v197_v17 = vsel %vm73_vm0, %v50_v14, 0.0  ;;  %v194_v18 = vsel %vm73_vm0, %v49_v15, 0.0  ;;  %v191_v19 = vsel %vm73_vm0, %v48_v16, 0.0  ;;  %v65_v14 = vld [vmem:[%s3038_s0 + $0x1c0] sm:$0xff]  ;;  %v64_v15 = vld [vmem:[%s3038_s0 + $0x1b8] sm:$0xff]  ;;  %vm1958_vm5 = vcmask 392512  }
  0x15   :  { %v2358_v38 = vunpack.c.0.s8 %v403_v31  ;;  %vm1962_vm6 = vcmask 458112   ;;  %vm1966_vm7 = vcmask 523712   ;;  %vm1970_vm8 = vcmask 589312  }
  0x16   :  { %vm1974_vm9 = vcmask 654912   ;;  %vm1978_vm10 = vcmask 720512   ;;  %vm1982_vm11 = vcmask 786112   ;;  %vm1986_vm12 = vcmask 851712  }
  0x17   :  { %vm1990_vm13 = vcmask 917312   ;;  %vm1994_vm14 = vcmask 982912   ;;  %vm1998_vm15 = vcmask 1048512  }
  0x1b   :  { %108 = vadd.xlane.f32.xlu2 %v107_v21  ;;  %105 = vadd.xlane.f32.xlu1 %v104_v22  ;;  %v52_v21 = vld [vmem:[%s3038_s0 + $0x158] sm:$0xff]  ;;  %v51_v22 = vld [vmem:[%s3038_s0 + $0x150] sm:$0xff] }
  0x1c   :  { %102 = vadd.xlane.f32.xlu0 %v101_v23  ;;  %v206_v23 = vsel %vm73_vm0, %v53_v20, 0.0  ;;  %v203_v24 = vsel %vm73_vm0, %v52_v21, 0.0  ;;  %v200_v25 = vsel %vm73_vm0, %v51_v22, 0.0  ;;  %v242_v22 = vsel %vm73_vm0, %v65_v14, 0.0 }
  0x23   :  { %117 = vadd.xlane.f32.xlu2 %v116_v27  ;;  %114 = vadd.xlane.f32.xlu1 %v113_v28  ;;  %v395_v27 = vunpack.c.l.s4 %v2152_v26  ;;  %v2153_v28 = vmov 842150450  }
  0x24   :  { %111 = vadd.xlane.f32.xlu0 %v110_v29  ;;  %v399_v29 = vunpack.c.l.s4 %v2153_v28 }
  0x25   :  { %v2354_v36 = vunpack.c.0.s8 %v395_v27 }
  0x26   :  { %v2356_v37 = vunpack.c.0.s8 %v399_v29 }
  0x2b   :  { %126 = vadd.xlane.f32.xlu2 %v125_v33  ;;  %123 = vadd.xlane.f32.xlu1 %v122_v34  ;;  %v407_v33 = vunpack.c.l.s4 %v2155_v32  ;;  %v56_v34 = vld [vmem:[%s3038_s0 + $0x178] sm:$0xff] }
  0x2c   :  { %120 = vadd.xlane.f32.xlu0 %v119_v35  ;;  %v55_v35 = vld [vmem:[%s3038_s0 + $0x170] sm:$0xff]  ;;  %v215_v43 = vsel %vm73_vm0, %v56_v34, 0.0  ;;  %v68_v34 = vld [vmem:[%s3038_s0 + $0x1d8] sm:$0xff] }
  0x2d   :  { %v212_v44 = vsel %vm73_vm0, %v55_v35, 0.0  ;;  %v67_v35 = vld [vmem:[%s3038_s0 + $0x1d0] sm:$0xff] }
  0x33   :  { %135 = vadd.xlane.f32.xlu2 %v134_v39  ;;  %132 = vadd.xlane.f32.xlu1 %v131_v40  ;;  %v54_v39 = vld [vmem:[%s3038_s0 + $0x168] sm:$0xff]  ;;  %v2363_v40 = vunpack.c.0.s8 %v407_v33 }
  0x34   :  { %129 = vadd.xlane.f32.xlu0 %v128_v41 }
  0x3b   :  { %144 = vadd.xlane.f32.xlu2 %v143_v45  ;;  %141 = vadd.xlane.f32.xlu1 %v140_v46  ;;  %v209_v45 = vsel %vm73_vm0, %v54_v39, 0.0  ;;  %v66_v39 = vld [vmem:[%s3038_s0 + $0x1c8] sm:$0xff] }
  0x3c   :  { %138 = vadd.xlane.f32.xlu0 %v137_v47 }
  0x43   :  { %153 = vadd.xlane.f32.xlu2 %v152_v51  ;;  %150 = vadd.xlane.f32.xlu1 %v149_v52  ;;  %v59_v51 = vld [vmem:[%s3038_s0 + $0x190] sm:$0xff]  ;;  %v58_v52 = vld [vmem:[%s3038_s0 + $0x188] sm:$0xff] }
  0x44   :  { %147 = vadd.xlane.f32.xlu0 %v146_v53  ;;  %v57_v53 = vld [vmem:[%s3038_s0 + $0x180] sm:$0xff] }
  0x4b   :  { %162 = vadd.xlane.f32.xlu2 %v161_v57  ;;  %159 = vadd.xlane.f32.xlu1 %v158_v58  ;;  %v224_v57 = vsel %vm73_vm0, %v59_v51, 0.0  ;;  %v221_v58 = vsel %vm73_vm0, %v58_v52, 0.0 }
  0x4c   :  { %156 = vadd.xlane.f32.xlu0 %v155_v59  ;;  %v218_v59 = vsel %vm73_vm0, %v57_v53, 0.0 }
  0x53   :  { %171 = vadd.xlane.f32.xlu2 %v170_v63  ;;  %168 = vadd.xlane.f32.xlu1 %v167_v0 }
  0x54   :  { %165 = vadd.xlane.f32.xlu0 %v164_v1 }
  0x5b   :  { %180 = vadd.xlane.f32.xlu2 %v179_v5  ;;  %177 = vadd.xlane.f32.xlu1 %v176_v6 }
  0x5c   :  { %174 = vadd.xlane.f32.xlu0 %v173_v7  ;;  %v60_v7 = vld [vmem:[%s3038_s0 + $0x198] sm:$0xff] }
  0x63   :  { %189 = vadd.xlane.f32.xlu2 %v188_v11  ;;  %186 = vadd.xlane.f32.xlu1 %v185_v12  ;;  %v227_v11 = vsel %vm73_vm0, %v60_v7, 0.0 }
  0x64   :  { %183 = vadd.xlane.f32.xlu0 %v182_v13 }
  0x6b   :  { %198 = vadd.xlane.f32.xlu2 %v197_v17  ;;  %195 = vadd.xlane.f32.xlu1 %v194_v18 }
  0x6c   :  { %192 = vadd.xlane.f32.xlu0 %v191_v19  ;;  %v63_v19 = vld [vmem:[%s3038_s0 + $0x1b0] sm:$0xff] }
  0x6d   :  { %v236_v26 = vsel %vm73_vm0, %v63_v19, 0.0 }
  0x73   :  { %207 = vadd.xlane.f32.xlu2 %v206_v23  ;;  %204 = vadd.xlane.f32.xlu1 %v203_v24  ;;  %v239_v23 = vsel %vm73_vm0, %v64_v15, 0.0 }
  0x74   :  { %201 = vadd.xlane.f32.xlu0 %v200_v25 }
  0x76   :  { %v82_v50 = vpop.xlane.xlu1 %81  ;;  %v88_v0 = vpop.xlane.xlu2 %87 }
  0x77   :  { %v76_v41 = vpop.xlane.xlu0 %75  ;;  %v268_v54 = vmul.f32 0.020408163, %v82_v50  ;;  %v270_v12 = vmul.f32 0.020408163, %v88_v0 }
  0x78   :  { %v266_v42 = vmul.f32 0.020408163, %v76_v41 }
  0x79   :  { %v429_v63 = vperm.slane %v268_v54, %v2354_v36  ;;  %v433_v1 = vperm.slane %v268_v54, %v2356_v37  ;;  %v437_v2 = vperm.slane %v268_v54, %v2358_v38  ;;  %v441_v6 = vperm.slane %v268_v54, %v2363_v40  ;;  %v71_v54 = vld [vmem:[%s3038_s0 + $0x1f0] sm:$0xff] }
  0x7a   :  { %v397_v46 = vperm.slane %v266_v42, %v2354_v36  ;;  %v401_v47 = vperm.slane %v266_v42, %v2356_v37  ;;  %v405_v48 = vperm.slane %v266_v42, %v2358_v38  ;;  %v409_v49 = vperm.slane %v266_v42, %v2363_v40 }
  0x7b   :  { %216 = vadd.xlane.f32.xlu2 %v215_v43  ;;  %213 = vadd.xlane.f32.xlu1 %v212_v44  ;;  %v461_v16 = vperm.slane %v270_v12, %v2354_v36  ;;  %v465_v20 = vperm.slane %v270_v12, %v2356_v37  ;;  %v469_v21 = vperm.slane %v270_v12, %v2358_v38  ;;  %v251_v42 = vsel %vm73_vm0, %v68_v34, 0.0 }
  0x7c   :  { %1418 = vst [vmem:[#allocation1] ss:$4 sm:$0xff] %v397_v46  ;;  %210 = vadd.xlane.f32.xlu0 %v209_v45  ;;  %v473_v24 = vperm.slane %v270_v12, %v2363_v40  ;;  %v248_v43 = vsel %vm73_vm0, %v67_v35, 0.0  ;;  %v245_v46 = vsel %vm73_vm0, %v66_v39, 0.0 }
  0x7d   :  { %1420 = vst [vmem:[#allocation1 + $0x1] ss:$4 sm:$0xff] %v401_v47 }
  0x7e   :  { %1422 = vst [vmem:[#allocation1 + $0x2] ss:$4 sm:$0xff] %v405_v48  ;;  %v85_v13 = vpop.xlane.xlu1 %84  ;;  %v91_v17 = vpop.xlane.xlu2 %90 }
  0x7f   :  { %1424 = vst [vmem:[#allocation1 + $0x3] ss:$4 sm:$0xff] %v409_v49  ;;  %v79_v55 = vpop.xlane.xlu0 %78  ;;  %v269_v18 = vmul.f32 0.020408163, %v85_v13  ;;  %v271_v44 = vmul.f32 0.020408163, %v91_v17 }
  0x80   :  { %v267_v56 = vmul.f32 0.020408163, %v79_v55  ;;  %v70_v55 = vld [vmem:[%s3038_s0 + $0x1e8] sm:$0xff]  ;;  %v72_v17 = vld [vmem:[%s3038_s0 + $0x1f8] sm:$0xff] }
  0x81   :  { %v445_v27 = vperm.slane %v269_v18, %v2354_v36  ;;  %v449_v30 = vperm.slane %v269_v18, %v2356_v37  ;;  %v453_v31 = vperm.slane %v269_v18, %v2358_v38  ;;  %v457_v32 = vperm.slane %v269_v18, %v2363_v40 }
  0x82   :  { %v413_v60 = vperm.slane %v267_v56, %v2354_v36  ;;  %v417_v61 = vperm.slane %v267_v56, %v2356_v37  ;;  %v421_v62 = vperm.slane %v267_v56, %v2358_v38  ;;  %v425_v8 = vperm.slane %v267_v56, %v2363_v40 }
  0x83   :  { %225 = vadd.xlane.f32.xlu2 %v224_v57  ;;  %222 = vadd.xlane.f32.xlu1 %v221_v58  ;;  %v477_v51 = vperm.slane %v271_v44, %v2354_v36  ;;  %v481_v53 = vperm.slane %v271_v44, %v2356_v37  ;;  %v485_v56 = vperm.slane %v271_v44, %v2358_v38  ;;  %v69_v58 = vld [vmem:[%s3038_s0 + $0x1e0] sm:$0xff]  ;;  %v263_v18 = vsel %vm73_vm0, %v72_v17, 0.0  ;;  %s2157_s0 = smov [#allocation2]  }
  0x84   :  { %1426 = vst [vmem:[#allocation1 + $0x20] ss:$4 sm:$0xff] %v413_v60  ;;  %219 = vadd.xlane.f32.xlu0 %v218_v59  ;;  %v489_v59 = vperm.slane %v271_v44, %v2363_v40  ;;  %v254_v0 = vsel %vm73_vm0, %v69_v58, 0.0  ;;  %v2156_v58 = vmov 0   ;;  %s2106_s18 = sshll.u32 %s2157_s0, 4  ;;  %s2107_s18 = int_to_ptr.vmem [resolvable:$true] %s2106_s18 }
  0x85   :  { %1428 = vst [vmem:[#allocation1 + $0x21] ss:$4 sm:$0xff] %v417_v61  ;;  %v260_v61 = vsel %vm73_vm0, %v71_v54, 0.0  ;;  %2124 = vset.pattern.permute.xlu2 %v2156_v58  ;;  %2123 = vset.pattern.permute.xlu1 %v2156_v58 }
  0x86   :  { %v2396_v5 = vld.sshfl [vmem:[#allocation1] sm:$0xff pattern:$0x73625140]  ;;  %1430 = vst [vmem:[#allocation1 + $0x22] ss:$4 sm:$0xff] %v421_v62  ;;  %v100_v41 = vpop.xlane.xlu2 %99  ;;  %v97_v52 = vpop.xlane.xlu1 %96  ;;  %v257_v62 = vsel %vm73_vm0, %v70_v55, 0.0  ;;  %2125 = vset.pattern.permute.xlu0 %v2156_v58 }
  0x87   :  { %1435 = vst [vmem:[#allocation1] ss:$4 sm:$0xff] %v429_v63  ;;  %v94_v28 = vpop.xlane.xlu0 %93  ;;  %v274_v57 = vmul.f32 0.020408163, %v100_v41  ;;  %vm2093_vm0 = vcmask 1041409  }
  0x88   :  { %1436 = vst [vmem:[#allocation1 + $0x1] ss:$4 sm:$0xff] %v433_v1  ;;  %v272_v33 = vmul.f32 0.020408163, %v94_v28 }
  0x89   :  { %1437 = vst [vmem:[#allocation1 + $0x2] ss:$4 sm:$0xff] %v437_v2  ;;  %v525_v1 = vperm.slane %v274_v57, %v2354_v36  ;;  %v273_v2 = vmul.f32 0.020408163, %v97_v52  ;;  %v529_v3 = vperm.slane %v274_v57, %v2356_v37  ;;  %v533_v4 = vperm.slane %v274_v57, %v2358_v38 }
  0x8a   :  { %1438 = vst [vmem:[#allocation1 + $0x3] ss:$4 sm:$0xff] %v441_v6  ;;  %v493_v45 = vperm.slane %v272_v33, %v2354_v36  ;;  %v497_v47 = vperm.slane %v272_v33, %v2356_v37  ;;  %v501_v48 = vperm.slane %v272_v33, %v2358_v38  ;;  %v505_v50 = vperm.slane %v272_v33, %v2363_v40 }
  0x8b   :  { %1432 = vst [vmem:[#allocation1 + $0x23] ss:$4 sm:$0xff] %v425_v8  ;;  %234 = vadd.xlane.f32.xlu2 %v233_v9  ;;  %231 = vadd.xlane.f32.xlu1 %v230_v10  ;;  %v537_v6 = vperm.slane %v274_v57, %v2363_v40  ;;  %v509_v9 = vperm.slane %v273_v2, %v2354_v36 }
  0x8c   :  { %228 = vadd.xlane.f32.xlu0 %v227_v11  ;;  %v513_v10 = vperm.slane %v273_v2, %v2356_v37  ;;  %v517_v11 = vperm.slane %v273_v2, %v2358_v38  ;;  %v521_v15 = vperm.slane %v273_v2, %v2363_v40 }
  0x8e   :  { %v109_v63 = vpop.xlane.xlu2 %108  ;;  %v106_v8 = vpop.xlane.xlu1 %105 }
  0x8f   :  { %v103_v12 = vpop.xlane.xlu0 %102  ;;  %v276_v13 = vmul.f32 0.020408163, %v106_v8  ;;  %v277_v35 = vmul.f32 0.020408163, %v109_v63 }
  0x90   :  { %v275_v19 = vmul.f32 0.020408163, %v103_v12 }
  0x91   :  { %v2421_v25 = vld.sshfl [vmem:[#allocation1] sm:$0xff pattern:$0x73625140]  ;;  %v585_v52 = vperm.slane %v277_v35, %v2363_v40 }
  0x92   :  { %1445 = vst [vmem:[#allocation1] ss:$4 sm:$0xff] %v461_v16  ;;  %v2425_v29 = vld.sshfl [vmem:[#allocation1 + $0x20] sm:$0xff pattern:$0x73625140]  ;;  %v553_v33 = vperm.slane %v275_v19, %v2363_v40 }
  0x93   :  { %1446 = vst [vmem:[#allocation1 + $0x1] ss:$4 sm:$0xff] %v465_v20  ;;  %243 = vadd.xlane.f32.xlu2 %v242_v22  ;;  %240 = vadd.xlane.f32.xlu1 %v239_v23  ;;  %v557_v20 = vperm.slane %v276_v13, %v2354_v36  ;;  %v565_v22 = vperm.slane %v276_v13, %v2358_v38 }
  0x94   :  { %1447 = vst [vmem:[#allocation1 + $0x2] ss:$4 sm:$0xff] %v469_v21  ;;  %237 = vadd.xlane.f32.xlu0 %v236_v26  ;;  %v561_v21 = vperm.slane %v276_v13, %v2356_v37  ;;  %v541_v26 = vperm.slane %v275_v19, %v2354_v36 }
  0x95   :  { %1448 = vst [vmem:[#allocation1 + $0x3] ss:$4 sm:$0xff] %v473_v24  ;;  %v569_v24 = vperm.slane %v276_v13, %v2363_v40 }
  0x96   :  { %1439 = vst [vmem:[#allocation1 + $0x20] ss:$4 sm:$0xff] %v445_v27  ;;  %v118_v16 = vpop.xlane.xlu2 %117  ;;  %v545_v27 = vperm.slane %v275_v19, %v2356_v37 }
  0x97   :  { %1440 = vst [vmem:[#allocation1 + $0x21] ss:$4 sm:$0xff] %v449_v30  ;;  %v112_v28 = vpop.xlane.xlu0 %111  ;;  %v549_v30 = vperm.slane %v275_v19, %v2358_v38 }
  0x98   :  { %1441 = vst [vmem:[#allocation1 + $0x22] ss:$4 sm:$0xff] %v453_v31  ;;  %v278_v31 = vmul.f32 0.020408163, %v112_v28 }
  0x99   :  { %1442 = vst [vmem:[#allocation1 + $0x23] ss:$4 sm:$0xff] %v457_v32 }
  0x9a   :  { %v589_v39 = vperm.slane %v278_v31, %v2354_v36  ;;  %v593_v41 = vperm.slane %v278_v31, %v2356_v37  ;;  %v601_v44 = vperm.slane %v278_v31, %v2363_v40 }
  0x9b   :  { %252 = vadd.xlane.f32.xlu2 %v251_v42  ;;  %249 = vadd.xlane.f32.xlu1 %v248_v43  ;;  %v597_v42 = vperm.slane %v278_v31, %v2358_v38 }
  0x9c   :  { %v2445_v49 = vld.sshfl [vmem:[#allocation1] sm:$0xff pattern:$0x73625140]  ;;  %246 = vadd.xlane.f32.xlu0 %v245_v46  ;;  %v577_v46 = vperm.slane %v277_v35, %v2356_v37 }
  0x9d   :  { %1455 = vst [vmem:[#allocation1] ss:$4 sm:$0xff] %v493_v45  ;;  %v573_v45 = vperm.slane %v277_v35, %v2354_v36 }
  0x9e   :  { %1456 = vst [vmem:[#allocation1 + $0x1] ss:$4 sm:$0xff] %v497_v47  ;;  %v2494_v34 = vpop.xlane.xlu2 %126  ;;  %v581_v47 = vperm.slane %v277_v35, %v2358_v38 }
  0x9f   :  { %1457 = vst [vmem:[#allocation1 + $0x2] ss:$4 sm:$0xff] %v501_v48  ;;  %v280_v48 = vmul.f32 0.020408163, %v118_v16  ;;  %v121_v54 = vpop.xlane.xlu0 %120 }
  0xa0   :  { %v2461_v60 = vld.sshfl [vmem:[#allocation1 + $0x20] sm:$0xff pattern:$0x73625140]  ;;  %1458 = vst [vmem:[#allocation1 + $0x3] ss:$4 sm:$0xff] %v505_v50 }
  0xa1   :  { %1449 = vst [vmem:[#allocation1 + $0x20] ss:$4 sm:$0xff] %v477_v51  ;;  %v115_v51 = vpop.xlane.xlu1 %114  ;;  %v621_v55 = vperm.slane %v280_v48, %v2354_v36  ;;  %v625_v57 = vperm.slane %v280_v48, %v2356_v37 }
  0xa2   :  { %1450 = vst [vmem:[#allocation1 + $0x21] ss:$4 sm:$0xff] %v481_v53 }
  0xa3   :  { %1451 = vst [vmem:[#allocation1 + $0x22] ss:$4 sm:$0xff] %v485_v56  ;;  %261 = vadd.xlane.f32.xlu2 %v260_v61  ;;  %258 = vadd.xlane.f32.xlu1 %v257_v62  ;;  %v279_v56 = vmul.f32 0.020408163, %v115_v51  ;;  %v633_v61 = vperm.slane %v280_v48, %v2363_v40 }
  0xa4   :  { %1452 = vst [vmem:[#allocation1 + $0x23] ss:$4 sm:$0xff] %v489_v59  ;;  %255 = vadd.xlane.f32.xlu0 %v254_v0  ;;  %v629_v59 = vperm.slane %v280_v48, %v2358_v38 }
  0xa5   :  { %v605_v63 = vperm.slane %v279_v56, %v2354_v36  ;;  %v609_v0 = vperm.slane %v279_v56, %v2356_v37 }
  0xa6   :  { %v2505_v50 = vpop.xlane.xlu2 %135 }
  0xa7   :  { %v2470_v7 = vld.sshfl [vmem:[#allocation1] sm:$0xff pattern:$0x73625140] }
  0xa8   :  { %1465 = vst [vmem:[#allocation1] ss:$4 sm:$0xff] %v525_v1 }
  0xa9   :  { %1466 = vst [vmem:[#allocation1 + $0x1] ss:$4 sm:$0xff] %v529_v3  ;;  %v124_v2 = vpop.xlane.xlu1 %123 }
  0xaa   :  { %1467 = vst [vmem:[#allocation1 + $0x2] ss:$4 sm:$0xff] %v533_v4  ;;  %v282_v3 = vmul.f32 0.020408163, %v124_v2  ;;  %v617_v4 = vperm.slane %v279_v56, %v2363_v40 }
  0xab   :  { %v2475_v14 = vld.sshfl [vmem:[#allocation1 + $0x20] sm:$0xff pattern:$0x73625140]  ;;  %1468 = vst [vmem:[#allocation1 + $0x3] ss:$4 sm:$0xff] %v537_v6  ;;  %v130_v6 = vpop.xlane.xlu0 %129 }
  0xac   :  { %1459 = vst [vmem:[#allocation1 + $0x20] ss:$4 sm:$0xff] %v509_v9  ;;  %264 = vadd.xlane.f32.xlu0 %v263_v18  ;;  %v653_v8 = vperm.slane %v282_v3, %v2354_v36  ;;  %v657_v9 = vperm.slane %v282_v3, %v2356_v37  ;;  %v665_v12 = vperm.slane %v282_v3, %v2363_v40 }
  0xad   :  { %1460 = vst [vmem:[#allocation1 + $0x21] ss:$4 sm:$0xff] %v513_v10  ;;  %v661_v10 = vperm.slane %v282_v3, %v2358_v38 }
  0xae   :  { %1461 = vst [vmem:[#allocation1 + $0x22] ss:$4 sm:$0xff] %v517_v11  ;;  %v2517_v1 = vpop.xlane.xlu2 %144 }
  0xaf   :  { %1462 = vst [vmem:[#allocation1 + $0x23] ss:$4 sm:$0xff] %v521_v15 }
  0xb1   :  { %v133_v16 = vpop.xlane.xlu1 %132 }
  0xb2   :  { %v2485_v23 = vld.sshfl [vmem:[#allocation1] sm:$0xff pattern:$0x73625140] }
  0xb3   :  { %1475 = vst [vmem:[#allocation1] ss:$4 sm:$0xff] %v557_v20  ;;  %v139_v20 = vpop.xlane.xlu0 %138 }
  0xb4   :  { %1476 = vst [vmem:[#allocation1 + $0x1] ss:$4 sm:$0xff] %v561_v21  ;;  %v283_v21 = vmul.f32 0.020408163, %v2494_v34  ;;  %v286_v34 = vmul.f32 0.020408163, %v2505_v50 }
  0xb5   :  { %1477 = vst [vmem:[#allocation1 + $0x2] ss:$4 sm:$0xff] %v565_v22 }
  0xb6   :  { %v2491_v32 = vld.sshfl [vmem:[#allocation1 + $0x20] sm:$0xff pattern:$0x73625140]  ;;  %1478 = vst [vmem:[#allocation1 + $0x3] ss:$4 sm:$0xff] %v569_v24  ;;  %v2532_v15 = vpop.xlane.xlu2 %153  ;;  %v673_v31 = vperm.slane %v283_v21, %v2356_v37 }
  0xb7   :  { %1469 = vst [vmem:[#allocation1 + $0x20] ss:$4 sm:$0xff] %v541_v26 }
  0xb8   :  { %1470 = vst [vmem:[#allocation1 + $0x21] ss:$4 sm:$0xff] %v545_v27 }
  0xb9   :  { %1471 = vst [vmem:[#allocation1 + $0x22] ss:$4 sm:$0xff] %v549_v30 }
  0xba   :  { %1472 = vst [vmem:[#allocation1 + $0x23] ss:$4 sm:$0xff] %v553_v33  ;;  %v677_v33 = vperm.slane %v283_v21, %v2358_v38 }
  0xbb   :  { %1749 = vperm.xlu2 %2124, %v2425_v29   ;;  %v613_v29 = vperm.slane %v279_v56, %v2358_v38  ;;  %v148_v35 = vpop.xlane.xlu0 %147  ;;  %v287_v56 = vmul.f32 0.020408163, %v139_v20 }
  0xbc   :  { %1746 = vperm.xlu1 %2123, %v2396_v5  }
  0xbd   :  { %v2499_v43 = vld.sshfl [vmem:[#allocation1] sm:$0xff pattern:$0x73625140] }
  0xbe   :  { %1485 = vst [vmem:[#allocation1] ss:$4 sm:$0xff] %v589_v39  ;;  %v2548_v30 = vpop.xlane.xlu2 %162  ;;  %v681_v39 = vperm.slane %v283_v21, %v2363_v40 }
  0xbf   :  { %1486 = vst [vmem:[#allocation1 + $0x1] ss:$4 sm:$0xff] %v593_v41 }
  0xc0   :  { %1487 = vst [vmem:[#allocation1 + $0x2] ss:$4 sm:$0xff] %v597_v42  ;;  %1752 = vperm.xlu0 %2125, %v2421_v25   ;;  %v281_v25 = vmul.f32 0.020408163, %v121_v54  ;;  %v717_v42 = vperm.slane %v286_v34, %v2354_v36 }
  0xc1   :  { %v1474_v53 = vld.sshfl [vmem:[#allocation1 + $0x20] sm:$0xff pattern:$0x73625140]  ;;  %1488 = vst [vmem:[#allocation1 + $0x3] ss:$4 sm:$0xff] %v601_v44 }
  0xc2   :  { %1479 = vst [vmem:[#allocation1 + $0x20] ss:$4 sm:$0xff] %v573_v45  ;;  %v637_v13 = vperm.slane %v281_v25, %v2354_v36  ;;  %v641_v17 = vperm.slane %v281_v25, %v2356_v37  ;;  %v649_v19 = vperm.slane %v281_v25, %v2363_v40  ;;  %v285_v44 = vmul.f32 0.020408163, %v133_v16 }
  0xc3   :  { %1480 = vst [vmem:[#allocation1 + $0x21] ss:$4 sm:$0xff] %v577_v46  ;;  %1755 = vperm.xlu2 %2124, %v2461_v60   ;;  %v284_v60 = vmul.f32 0.020408163, %v130_v6  ;;  %v2567_v50 = vpop.xlane.xlu0 %156 }
  0xc4   :  { %1481 = vst [vmem:[#allocation1 + $0x22] ss:$4 sm:$0xff] %v581_v47  ;;  %1758 = vperm.xlu1 %2123, %v2445_v49   ;;  %v645_v49 = vperm.slane %v281_v25, %v2358_v38  ;;  %v729_v47 = vperm.slane %v286_v34, %v2363_v40  ;;  %v701_v51 = vperm.slane %v285_v44, %v2354_v36 }
  0xc5   :  { %1482 = vst [vmem:[#allocation1 + $0x23] ss:$4 sm:$0xff] %v585_v52  ;;  %v685_v22 = vperm.slane %v284_v60, %v2354_v36  ;;  %v689_v24 = vperm.slane %v284_v60, %v2356_v37  ;;  %v693_v26 = vperm.slane %v284_v60, %v2358_v38  ;;  %v697_v28 = vperm.slane %v284_v60, %v2363_v40 }
  0xc6   :  { %v2560_v45 = vpop.xlane.xlu2 %171  ;;  %v709_v54 = vperm.slane %v285_v44, %v2358_v38  ;;  %v745_v25 = vperm.slane %v287_v56, %v2363_v40 }
  0xc8   :  { %v1493_v62 = vld.sshfl [vmem:[#allocation1] sm:$0xff pattern:$0x73625140]  ;;  %1773 = vperm.xlu0 %2125, %v1474_v53   ;;  %v705_v53 = vperm.slane %v285_v44, %v2356_v37 }
  0xc9   :  { %1495 = vst [vmem:[#allocation1] ss:$4 sm:$0xff] %v621_v55 }
  0xca   :  { %1496 = vst [vmem:[#allocation1 + $0x1] ss:$4 sm:$0xff] %v625_v57 }
  0xcb   :  { %1497 = vst [vmem:[#allocation1 + $0x2] ss:$4 sm:$0xff] %v629_v59  ;;  %1761 = vperm.xlu2 %2124, %v2475_v14   ;;  %v142_v14 = vpop.xlane.xlu1 %141  ;;  %v2583_v2 = vpop.xlane.xlu0 %165 }
  0xcc   :  { %v2520_v5 = vld.sshfl [vmem:[#allocation1 + $0x20] sm:$0xff pattern:$0x73625140]  ;;  %1498 = vst [vmem:[#allocation1 + $0x3] ss:$4 sm:$0xff] %v633_v61  ;;  %1764 = vperm.xlu1 %2123, %v2470_v7   ;;  %v669_v7 = vperm.slane %v283_v21, %v2354_v36 }
  0xcd   :  { %1489 = vst [vmem:[#allocation1 + $0x20] ss:$4 sm:$0xff] %v605_v63  ;;  %v288_v55 = vmul.f32 0.020408163, %v142_v14  ;;  %v733_v63 = vperm.slane %v287_v56, %v2354_v36 }
  0xce   :  { %1490 = vst [vmem:[#allocation1 + $0x21] ss:$4 sm:$0xff] %v609_v0  ;;  %v2575_v57 = vpop.xlane.xlu2 %180 }
  0xcf   :  { %1491 = vst [vmem:[#allocation1 + $0x22] ss:$4 sm:$0xff] %v613_v29  ;;  %v749_v59 = vperm.slane %v288_v55, %v2354_v36  ;;  %v757_v0 = vperm.slane %v288_v55, %v2358_v38  ;;  %v737_v29 = vperm.slane %v287_v56, %v2356_v37  ;;  %v761_v3 = vperm.slane %v288_v55, %v2363_v40 }
  0xd0   :  { %1492 = vst [vmem:[#allocation1 + $0x23] ss:$4 sm:$0xff] %v617_v4  ;;  %1782 = vperm.xlu0 %2125, %v1493_v62   ;;  %v753_v62 = vperm.slane %v288_v55, %v2356_v37  ;;  %v290_v4 = vmul.f32 0.020408163, %v148_v35  ;;  %v296_v55 = vmul.f32 0.020408163, %v2583_v2 }
  0xd1   :  { %v295_v2 = vmul.f32 0.020408163, %v2548_v30 }
  0xd3   :  { %v2528_v11 = vld.sshfl [vmem:[#allocation1] sm:$0xff pattern:$0x73625140]  ;;  %1767 = vperm.xlu2 %2124, %v2491_v32   ;;  %v721_v32 = vperm.slane %v286_v34, %v2356_v37  ;;  %v2562_v46 = vpop.xlane.xlu1 %150  ;;  %v869_v30 = vperm.slane %v295_v2, %v2358_v38 }
  0xd4   :  { %1505 = vst [vmem:[#allocation1] ss:$4 sm:$0xff] %v653_v8  ;;  %1770 = vperm.xlu1 %2123, %v2485_v23   ;;  %v725_v23 = vperm.slane %v286_v34, %v2358_v38  ;;  %v289_v8 = vmul.f32 0.020408163, %v2517_v1 }
  0xd5   :  { %1506 = vst [vmem:[#allocation1 + $0x1] ss:$4 sm:$0xff] %v657_v9  ;;  %v781_v9 = vperm.slane %v290_v4, %v2354_v36 }
  0xd6   :  { %1507 = vst [vmem:[#allocation1 + $0x2] ss:$4 sm:$0xff] %v661_v10  ;;  %v2592_v10 = vpop.xlane.xlu2 %189  ;;  %v765_v60 = vperm.slane %v289_v8, %v2354_v36  ;;  %v769_v1 = vperm.slane %v289_v8, %v2356_v37  ;;  %v777_v20 = vperm.slane %v289_v8, %v2363_v40 }
  0xd7   :  { %v2536_v18 = vld.sshfl [vmem:[#allocation1 + $0x20] sm:$0xff pattern:$0x73625140]  ;;  %1508 = vst [vmem:[#allocation1 + $0x3] ss:$4 sm:$0xff] %v665_v12  ;;  %v785_v12 = vperm.slane %v290_v4, %v2356_v37 }
  0xd8   :  { %1499 = vst [vmem:[#allocation1 + $0x20] ss:$4 sm:$0xff] %v637_v13  ;;  %v789_v13 = vperm.slane %v290_v4, %v2358_v38 }
  0xd9   :  { %1500 = vst [vmem:[#allocation1 + $0x21] ss:$4 sm:$0xff] %v641_v17  ;;  %v793_v17 = vperm.slane %v290_v4, %v2363_v40  ;;  %v861_v4 = vperm.slane %v295_v2, %v2354_v36 }
  0xda   :  { %1501 = vst [vmem:[#allocation1 + $0x22] ss:$4 sm:$0xff] %v645_v49  ;;  %v2599_v49 = vpop.xlane.xlu0 %174 }
  0xdb   :  { %1502 = vst [vmem:[#allocation1 + $0x23] ss:$4 sm:$0xff] %v649_v19  ;;  %1776 = vperm.xlu2 %2124, %v2499_v43   ;;  %v713_v43 = vperm.slane %v285_v44, %v2363_v40  ;;  %v2577_v58 = vpop.xlane.xlu1 %159  ;;  %v292_v19 = vmul.f32 0.020408163, %v2532_v15  ;;  %v293_v44 = vmul.f32 0.020408163, %v2567_v50 }
  0xdc   :  { %1779 = vperm.xlu1 %2123, %v2520_v5   ;;  %v741_v5 = vperm.slane %v287_v56, %v2358_v38 }
  0xdd   :  { %v821_v15 = vperm.slane %v292_v19, %v2358_v38  ;;  %v837_v50 = vperm.slane %v293_v44, %v2358_v38 }
  0xde   :  { %v2545_v27 = vld.sshfl [vmem:[#allocation1] sm:$0xff pattern:$0x73625140] }
  0xdf   :  { %1515 = vst [vmem:[#allocation1] ss:$4 sm:$0xff] %v685_v22  ;;  %v2606_v22 = vpop.xlane.xlu2 %198 }
  0xe0   :  { %1516 = vst [vmem:[#allocation1 + $0x1] ss:$4 sm:$0xff] %v689_v24 }
  0xe1   :  { %1517 = vst [vmem:[#allocation1 + $0x2] ss:$4 sm:$0xff] %v693_v26  ;;  %v813_v26 = vperm.slane %v292_v19, %v2354_v36 }
  0xe2   :  { %v1504_v41 = vld.sshfl [vmem:[#allocation1 + $0x20] sm:$0xff pattern:$0x73625140]  ;;  %1518 = vst [vmem:[#allocation1 + $0x3] ss:$4 sm:$0xff] %v697_v28  ;;  %v2614_v14 = vpop.xlane.xlu0 %183 }
  0xe3   :  { %1509 = vst [vmem:[#allocation1 + $0x20] ss:$4 sm:$0xff] %v669_v7  ;;  %1791 = vperm.xlu0 %2125, %v1504_v41   ;;  %1785 = vperm.xlu2 %2124, %v2536_v18   ;;  %v773_v18 = vperm.slane %v289_v8, %v2358_v38  ;;  %v291_v28 = vmul.f32 0.020408163, %v2562_v46  ;;  %v825_v7 = vperm.slane %v292_v19, %v2363_v40 }
  0xe4   :  { %1510 = vst [vmem:[#allocation1 + $0x21] ss:$4 sm:$0xff] %v673_v31  ;;  %1788 = vperm.xlu1 %2123, %v2528_v11   ;;  %v2594_v11 = vpop.xlane.xlu1 %168 }
  0xe5   :  { %1511 = vst [vmem:[#allocation1 + $0x22] ss:$4 sm:$0xff] %v677_v33  ;;  %v797_v33 = vperm.slane %v291_v28, %v2354_v36  ;;  %v801_v35 = vperm.slane %v291_v28, %v2356_v37  ;;  %v809_v41 = vperm.slane %v291_v28, %v2363_v40 }
  0xe6   :  { %1512 = vst [vmem:[#allocation1 + $0x23] ss:$4 sm:$0xff] %v681_v39  ;;  %v805_v39 = vperm.slane %v291_v28, %v2358_v38 }
  0xe9   :  { %v1523_v48 = vld.sshfl [vmem:[#allocation1] sm:$0xff pattern:$0x73625140] }
  0xea   :  { %1525 = vst [vmem:[#allocation1] ss:$4 sm:$0xff] %v717_v42  ;;  %v294_v42 = vmul.f32 0.020408163, %v2577_v58  ;;  %v2627_v46 = vpop.xlane.xlu0 %192  ;;  %v841_v58 = vperm.slane %v293_v44, %v2363_v40 }
  0xeb   :  { %1526 = vst [vmem:[#allocation1 + $0x1] ss:$4 sm:$0xff] %v721_v32  ;;  %1800 = vperm.xlu0 %2125, %v1523_v48   ;;  %1794 = vperm.xlu2 %2124, %v2545_v27   ;;  %v817_v27 = vperm.slane %v292_v19, %v2356_v37  ;;  %v2622_v32 = vpop.xlane.xlu2 %207 }
  0xec   :  { %1527 = vst [vmem:[#allocation1 + $0x2] ss:$4 sm:$0xff] %v725_v23  ;;  %v2608_v24 = vpop.xlane.xlu1 %177 }
  0xed   :  { %v1514_v52 = vld.sshfl [vmem:[#allocation1 + $0x20] sm:$0xff pattern:$0x73625140]  ;;  %1528 = vst [vmem:[#allocation1 + $0x3] ss:$4 sm:$0xff] %v729_v47  ;;  %v845_v47 = vperm.slane %v294_v42, %v2354_v36 }
  0xee   :  { %1519 = vst [vmem:[#allocation1 + $0x20] ss:$4 sm:$0xff] %v701_v51  ;;  %1797 = vperm.xlu1 %2123, %v1514_v52   ;;  %v849_v51 = vperm.slane %v294_v42, %v2356_v37  ;;  %v829_v52 = vperm.slane %v293_v44, %v2354_v36 }
  0xef   :  { %1520 = vst [vmem:[#allocation1 + $0x21] ss:$4 sm:$0xff] %v705_v53  ;;  %v853_v53 = vperm.slane %v294_v42, %v2358_v38 }
  0xf0   :  { %1521 = vst [vmem:[#allocation1 + $0x22] ss:$4 sm:$0xff] %v709_v54  ;;  %v833_v54 = vperm.slane %v293_v44, %v2356_v37 }
  0xf1   :  { %1522 = vst [vmem:[#allocation1 + $0x23] ss:$4 sm:$0xff] %v713_v43  ;;  %v857_v43 = vperm.slane %v294_v42, %v2363_v40 }
  0xf4   :  { %v1533_v61 = vld.sshfl [vmem:[#allocation1] sm:$0xff pattern:$0x73625140]  ;;  %v2624_v23 = vpop.xlane.xlu1 %186 }
  0xf5   :  { %1535 = vst [vmem:[#allocation1] ss:$4 sm:$0xff] %v749_v59  ;;  %v2638_v59 = vpop.xlane.xlu2 %216 }
  0xf6   :  { %1536 = vst [vmem:[#allocation1 + $0x1] ss:$4 sm:$0xff] %v753_v62  ;;  %1806 = vperm.xlu1 %2123, %v1533_v61   ;;  %v877_v62 = vperm.slane %v296_v55, %v2354_v36 }
  0xf7   :  { %1537 = vst [vmem:[#allocation1 + $0x2] ss:$4 sm:$0xff] %v757_v0  ;;  %v881_v0 = vperm.slane %v296_v55, %v2356_v37 }
  0xf8   :  { %v1524_v6 = vld.sshfl [vmem:[#allocation1 + $0x20] sm:$0xff pattern:$0x73625140]  ;;  %1538 = vst [vmem:[#allocation1 + $0x3] ss:$4 sm:$0xff] %v761_v3 }
  0xf9   :  { %1529 = vst [vmem:[#allocation1 + $0x20] ss:$4 sm:$0xff] %v733_v63  ;;  %1803 = vperm.xlu2 %2124, %v1524_v6   ;;  %v2643_v63 = vpop.xlane.xlu0 %201  ;;  %v865_v6 = vperm.slane %v295_v2, %v2356_v37 }
  0xfa   :  { %1530 = vst [vmem:[#allocation1 + $0x21] ss:$4 sm:$0xff] %v737_v29  ;;  %v885_v29 = vperm.slane %v296_v55, %v2358_v38 }
  0xfb   :  { %1531 = vst [vmem:[#allocation1 + $0x22] ss:$4 sm:$0xff] %v741_v5  ;;  %v889_v5 = vperm.slane %v296_v55, %v2363_v40  ;;  %v301_v55 = vmul.f32 0.020408163, %v2575_v57 }
  0xfc   :  { %1532 = vst [vmem:[#allocation1 + $0x23] ss:$4 sm:$0xff] %v745_v25  ;;  %v2640_v61 = vpop.xlane.xlu1 %195 }
  0xfd   :  { %v2651_v8 = vpop.xlane.xlu2 %225 }
  0xff   :  { %v1543_v16 = vld.sshfl [vmem:[#allocation1] sm:$0xff pattern:$0x73625140] }
 0x100   :  { %1545 = vst [vmem:[#allocation1] ss:$4 sm:$0xff] %v781_v9 }
 0x101   :  { %1546 = vst [vmem:[#allocation1 + $0x1] ss:$4 sm:$0xff] %v785_v12  ;;  %1812 = vperm.xlu2 %2124, %v1543_v16   ;;  %v873_v12 = vperm.slane %v295_v2, %v2363_v40  ;;  %v2658_v16 = vpop.xlane.xlu0 %210 }
 0x102   :  { %1547 = vst [vmem:[#allocation1 + $0x2] ss:$4 sm:$0xff] %v789_v13  ;;  %v298_v13 = vmul.f32 0.020408163, %v2560_v45 }
 0x103   :  { %v1534_v21 = vld.sshfl [vmem:[#allocation1 + $0x20] sm:$0xff pattern:$0x73625140]  ;;  %1548 = vst [vmem:[#allocation1 + $0x3] ss:$4 sm:$0xff] %v793_v17 }
 0x104   :  { %1539 = vst [vmem:[#allocation1 + $0x20] ss:$4 sm:$0xff] %v765_v60  ;;  %1809 = vperm.xlu0 %2125, %v1534_v21   ;;  %v2653_v9 = vpop.xlane.xlu1 %204  ;;  %v909_v17 = vperm.slane %v298_v13, %v2354_v36  ;;  %v297_v60 = vmul.f32 0.020408163, %v2594_v11  ;;  %v917_v19 = vperm.slane %v298_v13, %v2358_v38 }
 0x105   :  { %1540 = vst [vmem:[#allocation1 + $0x21] ss:$4 sm:$0xff] %v769_v1  ;;  %v913_v1 = vperm.slane %v298_v13, %v2356_v37  ;;  %v2666_v21 = vpop.xlane.xlu2 %234 }
 0x106   :  { %1541 = vst [vmem:[#allocation1 + $0x22] ss:$4 sm:$0xff] %v773_v18  ;;  %v893_v45 = vperm.slane %v297_v60, %v2354_v36  ;;  %v897_v11 = vperm.slane %v297_v60, %v2356_v37  ;;  %v905_v28 = vperm.slane %v297_v60, %v2363_v40 }
 0x107   :  { %1542 = vst [vmem:[#allocation1 + $0x23] ss:$4 sm:$0xff] %v777_v20  ;;  %v921_v20 = vperm.slane %v298_v13, %v2363_v40 }
 0x10a   :  { %v1553_v31 = vld.sshfl [vmem:[#allocation1] sm:$0xff pattern:$0x73625140] }
 0x10b   :  { %1555 = vst [vmem:[#allocation1] ss:$4 sm:$0xff] %v813_v26 }
 0x10c   :  { %1556 = vst [vmem:[#allocation1 + $0x1] ss:$4 sm:$0xff] %v817_v27  ;;  %1818 = vperm.xlu0 %2125, %v1553_v31   ;;  %v2668_v26 = vpop.xlane.xlu1 %213  ;;  %v2674_v31 = vpop.xlane.xlu0 %219 }
 0x10d   :  { %1557 = vst [vmem:[#allocation1 + $0x2] ss:$4 sm:$0xff] %v821_v15  ;;  %v901_v15 = vperm.slane %v297_v60, %v2358_v38 }
 0x10e   :  { %v1544_v34 = vld.sshfl [vmem:[#allocation1 + $0x20] sm:$0xff pattern:$0x73625140]  ;;  %1558 = vst [vmem:[#allocation1 + $0x3] ss:$4 sm:$0xff] %v825_v7 }
 0x10f   :  { %1549 = vst [vmem:[#allocation1 + $0x20] ss:$4 sm:$0xff] %v797_v33  ;;  %1815 = vperm.xlu1 %2123, %v1544_v34   ;;  %v300_v7 = vmul.f32 0.020408163, %v2608_v24  ;;  %v299_v33 = vmul.f32 0.020408163, %v2599_v49 }
 0x110   :  { %1550 = vst [vmem:[#allocation1 + $0x21] ss:$4 sm:$0xff] %v801_v35 }
 0x111   :  { %1551 = vst [vmem:[#allocation1 + $0x22] ss:$4 sm:$0xff] %v805_v39  ;;  %v941_v34 = vperm.slane %v300_v7, %v2354_v36  ;;  %v945_v39 = vperm.slane %v300_v7, %v2356_v37  ;;  %v949_v44 = vperm.slane %v300_v7, %v2358_v38  ;;  %v953_v24 = vperm.slane %v300_v7, %v2363_v40 }
 0x112   :  { %1552 = vst [vmem:[#allocation1 + $0x23] ss:$4 sm:$0xff] %v809_v41  ;;  %v2679_v41 = vpop.xlane.xlu2 %243 }
 0x114   :  { %v2681_v42 = vpop.xlane.xlu1 %222 }
 0x115   :  { %v1563_v48 = vld.sshfl [vmem:[#allocation1] sm:$0xff pattern:$0x73625140] }
 0x116   :  { %1565 = vst [vmem:[#allocation1] ss:$4 sm:$0xff] %v845_v47  ;;  %v925_v47 = vperm.slane %v299_v33, %v2354_v36 }
 0x117   :  { %1566 = vst [vmem:[#allocation1 + $0x1] ss:$4 sm:$0xff] %v849_v51  ;;  %1824 = vperm.xlu1 %2123, %v1563_v48   ;;  %v2686_v48 = vpop.xlane.xlu0 %228  ;;  %v929_v51 = vperm.slane %v299_v33, %v2356_v37 }
 0x118   :  { %1567 = vst [vmem:[#allocation1 + $0x2] ss:$4 sm:$0xff] %v853_v53  ;;  %v937_v53 = vperm.slane %v299_v33, %v2363_v40 }
 0x119   :  { %v1554_v56 = vld.sshfl [vmem:[#allocation1 + $0x20] sm:$0xff pattern:$0x73625140]  ;;  %1568 = vst [vmem:[#allocation1 + $0x3] ss:$4 sm:$0xff] %v857_v43 }
 0x11a   :  { %1559 = vst [vmem:[#allocation1 + $0x20] ss:$4 sm:$0xff] %v829_v52  ;;  %1821 = vperm.xlu2 %2124, %v1554_v56   ;;  %v933_v52 = vperm.slane %v299_v33, %v2358_v38  ;;  %v2692_v43 = vpop.xlane.xlu2 %252  ;;  %v1937_v33 = vlaneseq }
 0x11b   :  { %1560 = vst [vmem:[#allocation1 + $0x21] ss:$4 sm:$0xff] %v833_v54  ;;  %v302_v54 = vmul.f32 0.020408163, %v2614_v14 }
 0x11c   :  { %1561 = vst [vmem:[#allocation1 + $0x22] ss:$4 sm:$0xff] %v837_v50  ;;  %v2694_v50 = vpop.xlane.xlu1 %231 }
 0x11d   :  { %1562 = vst [vmem:[#allocation1 + $0x23] ss:$4 sm:$0xff] %v841_v58  ;;  %v973_v56 = vperm.slane %v302_v54, %v2354_v36  ;;  %v981_v2 = vperm.slane %v302_v54, %v2358_v38  ;;  %v985_v14 = vperm.slane %v302_v54, %v2363_v40 }
 0x120   :  { %v1573_v3 = vld.sshfl [vmem:[#allocation1] sm:$0xff pattern:$0x73625140] }
 0x121   :  { %1575 = vst [vmem:[#allocation1] ss:$4 sm:$0xff] %v877_v62  ;;  %v977_v62 = vperm.slane %v302_v54, %v2356_v37 }
 0x122   :  { %1576 = vst [vmem:[#allocation1 + $0x1] ss:$4 sm:$0xff] %v881_v0  ;;  %1830 = vperm.xlu2 %2124, %v1573_v3   ;;  %v2699_v0 = vpop.xlane.xlu0 %237  ;;  %v961_v3 = vperm.slane %v301_v55, %v2356_v37 }
 0x123   :  { %1577 = vst [vmem:[#allocation1 + $0x2] ss:$4 sm:$0xff] %v885_v29  ;;  %v957_v29 = vperm.slane %v301_v55, %v2354_v36 }
 0x124   :  { %v1564_v25 = vld.sshfl [vmem:[#allocation1 + $0x20] sm:$0xff pattern:$0x73625140]  ;;  %1578 = vst [vmem:[#allocation1 + $0x3] ss:$4 sm:$0xff] %v889_v5  ;;  %v965_v5 = vperm.slane %v301_v55, %v2358_v38 }
 0x125   :  { %1569 = vst [vmem:[#allocation1 + $0x20] ss:$4 sm:$0xff] %v861_v4  ;;  %1827 = vperm.xlu0 %2125, %v1564_v25   ;;  %v2706_v4 = vpop.xlane.xlu1 %240  ;;  %v304_v25 = vmul.f32 0.020408163, %v2592_v10 }
 0x126   :  { %1570 = vst [vmem:[#allocation1 + $0x21] ss:$4 sm:$0xff] %v865_v6  ;;  %v969_v6 = vperm.slane %v301_v55, %v2363_v40  ;;  %v308_v55 = vmul.f32 0.020408163, %v2643_v63 }
 0x127   :  { %1571 = vst [vmem:[#allocation1 + $0x22] ss:$4 sm:$0xff] %v869_v30  ;;  %v2710_v30 = vpop.xlane.xlu2 %261  ;;  %v1005_v13 = vperm.slane %v304_v25, %v2354_v36  ;;  %v1009_v60 = vperm.slane %v304_v25, %v2356_v37 }
 0x128   :  { %1572 = vst [vmem:[#allocation1 + $0x23] ss:$4 sm:$0xff] %v873_v12 }
 0x12a   :  { %v2712_v12 = vpop.xlane.xlu0 %246 }
 0x12b   :  { %v1583_v18 = vld.sshfl [vmem:[#allocation1] sm:$0xff pattern:$0x73625140] }
 0x12c   :  { %1585 = vst [vmem:[#allocation1] ss:$4 sm:$0xff] %v909_v17  ;;  %v303_v17 = vmul.f32 0.020408163, %v2624_v23 }
 0x12d   :  { %1586 = vst [vmem:[#allocation1 + $0x1] ss:$4 sm:$0xff] %v913_v1  ;;  %1836 = vperm.xlu0 %2125, %v1583_v18   ;;  %v1013_v18 = vperm.slane %v304_v25, %v2358_v38  ;;  %v2719_v10 = vpop.xlane.xlu1 %249 }
 0x12e   :  { %1587 = vst [vmem:[#allocation1 + $0x2] ss:$4 sm:$0xff] %v917_v19  ;;  %v1017_v19 = vperm.slane %v304_v25, %v2363_v40  ;;  %v997_v23 = vperm.slane %v303_v17, %v2358_v38  ;;  %v1073_v25 = vperm.slane %v308_v55, %v2356_v37 }
 0x12f   :  { %v1574_v27 = vld.sshfl [vmem:[#allocation1 + $0x20] sm:$0xff pattern:$0x73625140]  ;;  %1588 = vst [vmem:[#allocation1 + $0x3] ss:$4 sm:$0xff] %v921_v20  ;;  %v989_v20 = vperm.slane %v303_v17, %v2354_v36  ;;  %v1750_v7 = vpop.permute.xlu2 %1749 }
 0x130   :  { %1579 = vst [vmem:[#allocation1 + $0x20] ss:$4 sm:$0xff] %v893_v45  ;;  %1833 = vperm.xlu1 %2123, %v1574_v27   ;;  %v993_v27 = vperm.slane %v303_v17, %v2356_v37 }
 0x131   :  { %1580 = vst [vmem:[#allocation1 + $0x21] ss:$4 sm:$0xff] %v897_v11 }
 0x132   :  { %1581 = vst [vmem:[#allocation1 + $0x22] ss:$4 sm:$0xff] %v901_v15  ;;  %v2724_v11 = vpop.xlane.xlu0 %255  ;;  %v1001_v15 = vperm.slane %v303_v17, %v2363_v40  ;;  %v1077_v17 = vperm.slane %v308_v55, %v2358_v38 }
 0x133   :  { %1582 = vst [vmem:[#allocation1 + $0x23] ss:$4 sm:$0xff] %v905_v28  ;;  %v306_v28 = vmul.f32 0.020408163, %v2640_v61  ;;  %v2735_v61 = vand.u32 127, %v1937_v33 }
 0x136   :  { %v1593_v35 = vld.sshfl [vmem:[#allocation1] sm:$0xff pattern:$0x73625140] }
 0x137   :  { %1595 = vst [vmem:[#allocation1] ss:$4 sm:$0xff] %v941_v34  ;;  %v305_v34 = vmul.f32 0.020408163, %v2627_v46 }
 0x138   :  { %1596 = vst [vmem:[#allocation1 + $0x1] ss:$4 sm:$0xff] %v945_v39  ;;  %1842 = vperm.xlu1 %2123, %v1593_v35   ;;  %v1037_v35 = vperm.slane %v306_v28, %v2354_v36  ;;  %v2730_v39 = vpop.xlane.xlu1 %258 }
 0x139   :  { %1597 = vst [vmem:[#allocation1 + $0x2] ss:$4 sm:$0xff] %v949_v44  ;;  %v1021_v46 = vperm.slane %v305_v34, %v2354_v36  ;;  %v1029_v54 = vperm.slane %v305_v34, %v2358_v38 }
 0x13a   :  { %v1584_v49 = vld.sshfl [vmem:[#allocation1 + $0x20] sm:$0xff pattern:$0x73625140]  ;;  %1598 = vst [vmem:[#allocation1 + $0x3] ss:$4 sm:$0xff] %v953_v24  ;;  %v1041_v24 = vperm.slane %v306_v28, %v2356_v37 }
 0x13b   :  { %1589 = vst [vmem:[#allocation1 + $0x20] ss:$4 sm:$0xff] %v925_v47  ;;  %1839 = vperm.xlu2 %2124, %v1584_v49   ;;  %v1045_v47 = vperm.slane %v306_v28, %v2358_v38  ;;  %v1049_v49 = vperm.slane %v306_v28, %v2363_v40 }
 0x13c   :  { %1590 = vst [vmem:[#allocation1 + $0x21] ss:$4 sm:$0xff] %v929_v51  ;;  %v2737_v51 = vpop.xlane.xlu0 %264 }
 0x13d   :  { %1591 = vst [vmem:[#allocation1 + $0x22] ss:$4 sm:$0xff] %v933_v52 }
 0x13e   :  { %1592 = vst [vmem:[#allocation1 + $0x23] ss:$4 sm:$0xff] %v937_v53  ;;  %v1025_v53 = vperm.slane %v305_v34, %v2356_v37 }
 0x141   :  { %v1603_v58 = vld.sshfl [vmem:[#allocation1] sm:$0xff pattern:$0x73625140] }
 0x142   :  { %1605 = vst [vmem:[#allocation1] ss:$4 sm:$0xff] %v973_v56  ;;  %v1756_v56 = vpop.permute.xlu2 %1755 }
 0x143   :  { %1606 = vst [vmem:[#allocation1 + $0x1] ss:$4 sm:$0xff] %v977_v62  ;;  %1848 = vperm.xlu2 %2124, %v1603_v58   ;;  %v1033_v58 = vperm.slane %v305_v34, %v2363_v40  ;;  %v2745_v62 = vadd.s32 4294967288, %v2735_v61  ;;  %v310_v34 = vmul.f32 0.020408163, %v2622_v32 }
 0x144   :  { %1607 = vst [vmem:[#allocation1 + $0x2] ss:$4 sm:$0xff] %v981_v2  ;;  %v1747_v2 = vpop.permute.xlu1 %1746 }
 0x145   :  { %v1594_v57 = vld.sshfl [vmem:[#allocation1 + $0x20] sm:$0xff pattern:$0x73625140]  ;;  %1608 = vst [vmem:[#allocation1 + $0x3] ss:$4 sm:$0xff] %v985_v14  ;;  %v1939_v63 = vperm.slane %v1747_v2, %v2735_v61 }
 0x146   :  { %1599 = vst [vmem:[#allocation1 + $0x20] ss:$4 sm:$0xff] %v957_v29  ;;  %1845 = vperm.xlu0 %2125, %v1594_v57   ;;  %v307_v14 = vmul.f32 0.020408163, %v2606_v22  ;;  %v1069_v29 = vperm.slane %v308_v55, %v2354_v36  ;;  %v2752_v57 = vadd.s32 4294967280, %v2735_v61 }
 0x147   :  { %1600 = vst [vmem:[#allocation1 + $0x21] ss:$4 sm:$0xff] %v961_v3  ;;  %v1941_v3 = vperm.slane %v1750_v7, %v2745_v62  ;;  %v2768_v7 = vadd.s32 4294967264, %v2735_v61 }
 0x148   :  { %1601 = vst [vmem:[#allocation1 + $0x22] ss:$4 sm:$0xff] %v965_v5  ;;  %v1753_v5 = vpop.permute.xlu0 %1752  ;;  %v1065_v33 = vperm.slane %v307_v14, %v2363_v40 }
 0x149   :  { %1602 = vst [vmem:[#allocation1 + $0x23] ss:$4 sm:$0xff] %v969_v6  ;;  %v1943_v22 = vsel %vm1942_vm1, %v1941_v3, %v1939_v63 }
 0x14c   :  { %v1613_v1 = vld.sshfl [vmem:[#allocation1] sm:$0xff pattern:$0x73625140] }
 0x14d   :  { %1615 = vst [vmem:[#allocation1] ss:$4 sm:$0xff] %v1005_v13  ;;  %v2756_v13 = vadd.s32 4294967272, %v2735_v61 }
 0x14e   :  { %1616 = vst [vmem:[#allocation1 + $0x1] ss:$4 sm:$0xff] %v1009_v60  ;;  %1854 = vperm.xlu0 %2125, %v1613_v1   ;;  %v1945_v60 = vperm.slane %v1753_v5, %v2752_v57  ;;  %v1081_v1 = vperm.slane %v308_v55, %v2363_v40 }
 0x14f   :  { %1617 = vst [vmem:[#allocation1 + $0x2] ss:$4 sm:$0xff] %v1013_v18  ;;  %v1053_v18 = vperm.slane %v307_v14, %v2354_v36 }
 0x150   :  { %v1604_v45 = vld.sshfl [vmem:[#allocation1 + $0x20] sm:$0xff pattern:$0x73625140]  ;;  %1618 = vst [vmem:[#allocation1 + $0x3] ss:$4 sm:$0xff] %v1017_v19  ;;  %v1057_v19 = vperm.slane %v307_v14, %v2356_v37  ;;  %v1947_v28 = vsel %vm1946_vm2, %v1945_v60, %v1943_v22 }
 0x151   :  { %1609 = vst [vmem:[#allocation1 + $0x20] ss:$4 sm:$0xff] %v989_v20  ;;  %1851 = vperm.xlu1 %2123, %v1604_v45   ;;  %v1949_v45 = vperm.slane %v1756_v56, %v2756_v13  ;;  %v1113_v56 = vperm.slane %v310_v34, %v2363_v40 }
 0x152   :  { %1610 = vst [vmem:[#allocation1 + $0x21] ss:$4 sm:$0xff] %v993_v27  ;;  %v1762_v27 = vpop.permute.xlu2 %1761 }
 0x153   :  { %1611 = vst [vmem:[#allocation1 + $0x22] ss:$4 sm:$0xff] %v997_v23  ;;  %v1759_v23 = vpop.permute.xlu1 %1758 }
 0x154   :  { %1612 = vst [vmem:[#allocation1 + $0x23] ss:$4 sm:$0xff] %v1001_v15  ;;  %v1061_v15 = vperm.slane %v307_v14, %v2358_v38 }
 0x157   :  { %v1623_v44 = vld.sshfl [vmem:[#allocation1] sm:$0xff pattern:$0x73625140] }
 0x158   :  { %1625 = vst [vmem:[#allocation1] ss:$4 sm:$0xff] %v1037_v35  ;;  %v1951_v35 = vsel %vm1950_vm3, %v1949_v45, %v1947_v28 }
 0x159   :  { %1626 = vst [vmem:[#allocation1 + $0x1] ss:$4 sm:$0xff] %v1041_v24  ;;  %1860 = vperm.xlu1 %2123, %v1623_v44   ;;  %v1953_v44 = vperm.slane %v1759_v23, %v2768_v7  ;;  %v1101_v24 = vperm.slane %v310_v34, %v2354_v36 }
 0x15a   :  { %1627 = vst [vmem:[#allocation1 + $0x2] ss:$4 sm:$0xff] %v1045_v47  ;;  %v309_v47 = vmul.f32 0.020408163, %v2653_v9  ;;  %v2787_v9 = vadd.s32 4294967240, %v2735_v61  ;;  %v1768_v14 = vpop.permute.xlu2 %1767 }
 0x15b   :  { %v1614_v52 = vld.sshfl [vmem:[#allocation1 + $0x20] sm:$0xff pattern:$0x73625140]  ;;  %1628 = vst [vmem:[#allocation1 + $0x3] ss:$4 sm:$0xff] %v1049_v49  ;;  %v2777_v49 = vadd.s32 4294967256, %v2735_v61  ;;  %v1765_v55 = vpop.permute.xlu1 %1764 }
 0x15c   :  { %1619 = vst [vmem:[#allocation1 + $0x20] ss:$4 sm:$0xff] %v1021_v46  ;;  %1857 = vperm.xlu2 %2124, %v1614_v52   ;;  %v1955_v46 = vsel %vm1954_vm4, %v1953_v44, %v1951_v35  ;;  %v1105_v52 = vperm.slane %v310_v34, %v2356_v37  ;;  %v1089_v3 = vperm.slane %v309_v47, %v2356_v37 }
 0x15d   :  { %1620 = vst [vmem:[#allocation1 + $0x21] ss:$4 sm:$0xff] %v1025_v53  ;;  %v1109_v53 = vperm.slane %v310_v34, %v2358_v38  ;;  %v1957_v2 = vperm.slane %v1762_v27, %v2777_v49  ;;  %v1093_v63 = vperm.slane %v309_v47, %v2358_v38  ;;  %v1965_v22 = vperm.slane %v1768_v14, %v2787_v9 }
 0x15e   :  { %1621 = vst [vmem:[#allocation1 + $0x22] ss:$4 sm:$0xff] %v1029_v54  ;;  %v2783_v54 = vadd.s32 4294967248, %v2735_v61  ;;  %v311_v27 = vmul.f32 0.020408163, %v2658_v16 }
 0x15f   :  { %1622 = vst [vmem:[#allocation1 + $0x23] ss:$4 sm:$0xff] %v1033_v58  ;;  %v1085_v58 = vperm.slane %v309_v47, %v2354_v36  ;;  %v1959_v5 = vsel %vm1958_vm5, %v1957_v2, %v1955_v46  ;;  %v2825_v2 = vadd.s32 4294967200, %v2735_v61 }
 0x160   :  { %v1117_v44 = vperm.slane %v311_v27, %v2354_v36 }
 0x162   :  { %v1633_v6 = vld.sshfl [vmem:[#allocation1] sm:$0xff pattern:$0x73625140] }
 0x163   :  { %1635 = vst [vmem:[#allocation1] ss:$4 sm:$0xff] %v1069_v29  ;;  %v1771_v45 = vpop.permute.xlu1 %1770 }
 0x164   :  { %1636 = vst [vmem:[#allocation1 + $0x1] ss:$4 sm:$0xff] %v1073_v25  ;;  %1866 = vperm.xlu2 %2124, %v1633_v6   ;;  %v1961_v6 = vperm.slane %v1765_v55, %v2783_v54  ;;  %v1097_v25 = vperm.slane %v309_v47, %v2363_v40  ;;  %v1129_v55 = vperm.slane %v311_v27, %v2363_v40 }
 0x165   :  { %1637 = vst [vmem:[#allocation1 + $0x2] ss:$4 sm:$0xff] %v1077_v17  ;;  %v312_v17 = vmul.f32 0.020408163, %v2668_v26 }
 0x166   :  { %v1624_v20 = vld.sshfl [vmem:[#allocation1 + $0x20] sm:$0xff pattern:$0x73625140]  ;;  %1638 = vst [vmem:[#allocation1 + $0x3] ss:$4 sm:$0xff] %v1081_v1  ;;  %v1963_v60 = vsel %vm1962_vm6, %v1961_v6, %v1959_v5  ;;  %v2800_v1 = vadd.s32 4294967224, %v2735_v61 }
 0x167   :  { %1629 = vst [vmem:[#allocation1 + $0x20] ss:$4 sm:$0xff] %v1053_v18  ;;  %1863 = vperm.xlu0 %2125, %v1624_v20   ;;  %v1967_v18 = vsel %vm1966_vm7, %v1965_v22, %v1963_v60  ;;  %v2804_v20 = vadd.s32 4294967232, %v2735_v61  ;;  %v1133_v26 = vperm.slane %v312_v17, %v2354_v36  ;;  %v1137_v23 = vperm.slane %v312_v17, %v2356_v37 }
 0x168   :  { %1630 = vst [vmem:[#allocation1 + $0x21] ss:$4 sm:$0xff] %v1057_v19  ;;  %v1774_v19 = vpop.permute.xlu0 %1773  ;;  %v1145_v35 = vperm.slane %v312_v17, %v2363_v40  ;;  %v313_v5 = vmul.f32 0.020408163, %v2638_v59 }
 0x169   :  { %1631 = vst [vmem:[#allocation1 + $0x22] ss:$4 sm:$0xff] %v1061_v15  ;;  %v1969_v28 = vperm.slane %v1771_v45, %v2804_v20  ;;  %v1973_v34 = vperm.slane %v1774_v19, %v2800_v1  ;;  %v2841_v45 = vadd.s32 4294967192, %v2735_v61 }
 0x16a   :  { %1632 = vst [vmem:[#allocation1 + $0x23] ss:$4 sm:$0xff] %v1065_v33  ;;  %v1141_v33 = vperm.slane %v312_v17, %v2358_v38  ;;  %v1149_v19 = vperm.slane %v313_v5, %v2354_v36 }
 0x16b   :  { %v1971_v16 = vsel %vm1970_vm8, %v1969_v28, %v1967_v18  ;;  %v1157_v28 = vperm.slane %v313_v5, %v2358_v38 }
 0x16c   :  { %v1975_v47 = vsel %vm1974_vm9, %v1973_v34, %v1971_v16  ;;  %v316_v34 = vmul.f32 0.020408163, %v2651_v8  ;;  %v2850_v16 = vadd.s32 4294967176, %v2735_v61  ;;  %v315_v8 = vmul.f32 0.020408163, %v2681_v42 }
 0x16d   :  { %v1643_v32 = vld.sshfl [vmem:[#allocation1] sm:$0xff pattern:$0x73625140] }
 0x16e   :  { %1645 = vst [vmem:[#allocation1] ss:$4 sm:$0xff] %v1101_v24  ;;  %v2816_v24 = vadd.s32 4294967216, %v2735_v61  ;;  %v1181_v42 = vperm.slane %v315_v8, %v2354_v36 }
 0x16f   :  { %1646 = vst [vmem:[#allocation1 + $0x1] ss:$4 sm:$0xff] %v1105_v52  ;;  %1872 = vperm.xlu0 %2125, %v1643_v32   ;;  %v1121_v52 = vperm.slane %v311_v27, %v2356_v37  ;;  %v1777_v32 = vpop.permute.xlu2 %1776 }
 0x170   :  { %1647 = vst [vmem:[#allocation1 + $0x2] ss:$4 sm:$0xff] %v1109_v53  ;;  %v1125_v53 = vperm.slane %v311_v27, %v2358_v38  ;;  %v1783_v14 = vpop.permute.xlu0 %1782 }
 0x171   :  { %v1634_v29 = vld.sshfl [vmem:[#allocation1 + $0x20] sm:$0xff pattern:$0x73625140]  ;;  %1648 = vst [vmem:[#allocation1 + $0x3] ss:$4 sm:$0xff] %v1113_v56  ;;  %v1985_v60 = vperm.slane %v1783_v14, %v2825_v2 }
 0x172   :  { %1639 = vst [vmem:[#allocation1 + $0x20] ss:$4 sm:$0xff] %v1085_v58  ;;  %1869 = vperm.xlu1 %2123, %v1634_v29   ;;  %v314_v56 = vmul.f32 0.020408163, %v2674_v31  ;;  %v1977_v58 = vperm.slane %v1777_v32, %v2816_v24  ;;  %v2828_v29 = vadd.s32 4294967208, %v2735_v61  ;;  %v1197_v32 = vperm.slane %v316_v34, %v2354_v36 }
 0x173   :  { %1640 = vst [vmem:[#allocation1 + $0x21] ss:$4 sm:$0xff] %v1089_v3  ;;  %v1780_v3 = vpop.permute.xlu1 %1779 }
 0x174   :  { %1641 = vst [vmem:[#allocation1 + $0x22] ss:$4 sm:$0xff] %v1093_v63  ;;  %v1979_v63 = vsel %vm1978_vm10, %v1977_v58, %v1975_v47  ;;  %v1165_v6 = vperm.slane %v314_v56, %v2354_v36  ;;  %v1169_v31 = vperm.slane %v314_v56, %v2356_v37  ;;  %v1981_v17 = vperm.slane %v1780_v3, %v2828_v29 }
 0x175   :  { %1642 = vst [vmem:[#allocation1 + $0x23] ss:$4 sm:$0xff] %v1097_v25  ;;  %v1173_v22 = vperm.slane %v314_v56, %v2358_v38  ;;  %v1177_v18 = vperm.slane %v314_v56, %v2363_v40  ;;  %v2853_v47 = vadd.s32 4294967184, %v2735_v61  ;;  %v1205_v58 = vperm.slane %v316_v34, %v2358_v38 }
 0x176   :  { %v1983_v59 = vsel %vm1982_vm11, %v1981_v17, %v1979_v63  ;;  %v1209_v3 = vperm.slane %v316_v34, %v2363_v40 }
 0x177   :  { %v1987_v27 = vsel %vm1986_vm12, %v1985_v60, %v1983_v59  ;;  %v318_v60 = vmul.f32 0.020408163, %v2694_v50 }
 0x178   :  { %v1653_v15 = vld.sshfl [vmem:[#allocation1] sm:$0xff pattern:$0x73625140] }
 0x179   :  { %1655 = vst [vmem:[#allocation1] ss:$4 sm:$0xff] %v1133_v26  ;;  %v1153_v26 = vperm.slane %v313_v5, %v2356_v37  ;;  %v1237_v50 = vperm.slane %v318_v60, %v2358_v38 }
 0x17a   :  { %1878 = vperm.xlu1 %2123, %v1653_v15   ;;  %1656 = vst [vmem:[#allocation1 + $0x1] ss:$4 sm:$0xff] %v1137_v23  ;;  %v1786_v15 = vpop.permute.xlu2 %1785 }
 0x17b   :  { %1657 = vst [vmem:[#allocation1 + $0x2] ss:$4 sm:$0xff] %v1141_v33  ;;  %v1161_v33 = vperm.slane %v313_v5, %v2363_v40 }
 0x17c   :  { %v1644_v46 = vld.sshfl [vmem:[#allocation1 + $0x20] sm:$0xff pattern:$0x73625140]  ;;  %1658 = vst [vmem:[#allocation1 + $0x3] ss:$4 sm:$0xff] %v1145_v35  ;;  %v1989_v35 = vperm.slane %v1786_v15, %v2841_v45  ;;  %v1233_v15 = vperm.slane %v318_v60, %v2356_v37 }
 0x17d   :  { %1649 = vst [vmem:[#allocation1 + $0x20] ss:$4 sm:$0xff] %v1117_v44  ;;  %1875 = vperm.xlu2 %2124, %v1644_v46   ;;  %v1792_v44 = vpop.permute.xlu0 %1791  ;;  %v1789_v46 = vpop.permute.xlu1 %1788 }
 0x17e   :  { %1650 = vst [vmem:[#allocation1 + $0x21] ss:$4 sm:$0xff] %v1121_v52  ;;  %v1991_v52 = vsel %vm1990_vm13, %v1989_v35, %v1987_v27  ;;  %v1993_v56 = vperm.slane %v1789_v46, %v2853_v47  ;;  %v1997_v14 = vperm.slane %v1792_v44, %v2850_v16  ;;  %v1229_v27 = vperm.slane %v318_v60, %v2354_v36 }
 0x17f   :  { %1651 = vst [vmem:[#allocation1 + $0x22] ss:$4 sm:$0xff] %v1125_v53  ;;  %v1201_v53 = vperm.slane %v316_v34, %v2356_v37  ;;  %v1241_v35 = vperm.slane %v318_v60, %v2363_v40 }
 0x180   :  { %1652 = vst [vmem:[#allocation1 + $0x23] ss:$4 sm:$0xff] %v1129_v55  ;;  %v1995_v63 = vsel %vm1994_vm14, %v1993_v56, %v1991_v52 }
 0x181   :  { %v2866_v5 = vsel %vm1998_vm15, %v1997_v14, %v1995_v63  ;;  %v319_v63 = vmul.f32 0.020408163, %v2666_v21 }
 0x182   :  { %v1795_v17 = vpop.permute.xlu2 %1794 }
 0x183   :  { %v1663_v25 = vld.sshfl [vmem:[#allocation1] sm:$0xff pattern:$0x73625140] }
 0x184   :  { %1665 = vst [vmem:[#allocation1] ss:$4 sm:$0xff] %v1165_v6  ;;  %v1185_v6 = vperm.slane %v315_v8, %v2356_v37 }
 0x185   :  { %1884 = vperm.xlu2 %2124, %v1663_v25   ;;  %1666 = vst [vmem:[#allocation1 + $0x1] ss:$4 sm:$0xff] %v1169_v31  ;;  %v1189_v25 = vperm.slane %v315_v8, %v2358_v38  ;;  %v1798_v59 = vpop.permute.xlu1 %1797 }
 0x186   :  { %1667 = vst [vmem:[#allocation1 + $0x2] ss:$4 sm:$0xff] %v1173_v22  ;;  %v1193_v22 = vperm.slane %v315_v8, %v2363_v40 }
 0x187   :  { %v1654_v23 = vld.sshfl [vmem:[#allocation1 + $0x20] sm:$0xff pattern:$0x73625140]  ;;  %1668 = vst [vmem:[#allocation1 + $0x3] ss:$4 sm:$0xff] %v1177_v18  ;;  %v1801_v18 = vpop.permute.xlu0 %1800 }
 0x188   :  { %1659 = vst [vmem:[#allocation1 + $0x20] ss:$4 sm:$0xff] %v1149_v19  ;;  %1881 = vperm.xlu0 %2125, %v1654_v23   ;;  %v317_v19 = vmul.f32 0.020408163, %v2686_v48  ;;  %v2001_v23 = vperm.slane %v1798_v59, %v2745_v62  ;;  %v1249_v59 = vperm.slane %v319_v63, %v2356_v37 }
 0x189   :  { %1660 = vst [vmem:[#allocation1 + $0x21] ss:$4 sm:$0xff] %v1153_v26  ;;  %v2000_v26 = vperm.slane %v1795_v17, %v2735_v61 }
 0x18a   :  { %1661 = vst [vmem:[#allocation1 + $0x22] ss:$4 sm:$0xff] %v1157_v28  ;;  %v1213_v44 = vperm.slane %v317_v19, %v2354_v36  ;;  %v1217_v46 = vperm.slane %v317_v19, %v2356_v37  ;;  %v1221_v8 = vperm.slane %v317_v19, %v2358_v38 }
 0x18b   :  { %1662 = vst [vmem:[#allocation1 + $0x23] ss:$4 sm:$0xff] %v1161_v33  ;;  %v2003_v33 = vperm.slane %v1801_v18, %v2752_v57  ;;  %v2002_v34 = vsel %vm1942_vm1, %v2001_v23, %v2000_v26  ;;  %v1245_v18 = vperm.slane %v319_v63, %v2354_v36  ;;  %v1253_v26 = vperm.slane %v319_v63, %v2358_v38 }
 0x18c   :  { %v1257_v23 = vperm.slane %v319_v63, %v2363_v40 }
 0x18d   :  { %v2004_v48 = vsel %vm1946_vm2, %v2003_v33, %v2002_v34  ;;  %v1807_v14 = vpop.permute.xlu1 %1806 }
 0x18e   :  { %v1673_v55 = vld.sshfl [vmem:[#allocation1] sm:$0xff pattern:$0x73625140] }
 0x18f   :  { %1675 = vst [vmem:[#allocation1] ss:$4 sm:$0xff] %v1197_v32  ;;  %v1804_v32 = vpop.permute.xlu2 %1803 }
 0x190   :  { %1890 = vperm.xlu0 %2125, %v1673_v55   ;;  %1676 = vst [vmem:[#allocation1 + $0x1] ss:$4 sm:$0xff] %v1201_v53  ;;  %v1225_v53 = vperm.slane %v317_v19, %v2363_v40  ;;  %v320_v55 = vmul.f32 0.020408163, %v2699_v0  ;;  %v2005_v56 = vperm.slane %v1804_v32, %v2756_v13 }
 0x191   :  { %1677 = vst [vmem:[#allocation1 + $0x2] ss:$4 sm:$0xff] %v1205_v58  ;;  %v1810_v58 = vpop.permute.xlu0 %1809 }
 0x192   :  { %v1664_v31 = vld.sshfl [vmem:[#allocation1 + $0x20] sm:$0xff pattern:$0x73625140]  ;;  %1678 = vst [vmem:[#allocation1 + $0x3] ss:$4 sm:$0xff] %v1209_v3  ;;  %v2006_v3 = vsel %vm1950_vm3, %v2005_v56, %v2004_v48  ;;  %v2009_v0 = vperm.slane %v1810_v58, %v2777_v49  ;;  %v1269_v17 = vperm.slane %v320_v55, %v2358_v38  ;;  %v1273_v60 = vperm.slane %v320_v55, %v2363_v40 }
 0x193   :  { %1887 = vperm.xlu1 %2123, %v1664_v31   ;;  %1669 = vst [vmem:[#allocation1 + $0x20] ss:$4 sm:$0xff] %v1181_v42  ;;  %v1261_v42 = vperm.slane %v320_v55, %v2354_v36  ;;  %v1265_v31 = vperm.slane %v320_v55, %v2356_v37  ;;  %v321_v48 = vmul.f32 0.020408163, %v2706_v4 }
 0x194   :  { %1670 = vst [vmem:[#allocation1 + $0x21] ss:$4 sm:$0xff] %v1185_v6  ;;  %v2007_v6 = vperm.slane %v1807_v14, %v2768_v7 }
 0x195   :  { %1671 = vst [vmem:[#allocation1 + $0x22] ss:$4 sm:$0xff] %v1189_v25  ;;  %v1277_v4 = vperm.slane %v321_v48, %v2354_v36  ;;  %v1281_v58 = vperm.slane %v321_v48, %v2356_v37  ;;  %v1289_v63 = vperm.slane %v321_v48, %v2363_v40 }
 0x196   :  { %1672 = vst [vmem:[#allocation1 + $0x23] ss:$4 sm:$0xff] %v1193_v22  ;;  %v2008_v22 = vsel %vm1954_vm4, %v2007_v6, %v2006_v3  ;;  %v1285_v3 = vperm.slane %v321_v48, %v2358_v38 }
 0x197   :  { %v2010_v21 = vsel %vm1958_vm5, %v2009_v0, %v2008_v22 }
 0x199   :  { %v1683_v28 = vld.sshfl [vmem:[#allocation1] sm:$0xff pattern:$0x73625140]  ;;  %v1819_v33 = vpop.permute.xlu0 %1818 }
 0x19a   :  { %1685 = vst [vmem:[#allocation1] ss:$4 sm:$0xff] %v1229_v27  ;;  %v1813_v27 = vpop.permute.xlu2 %1812 }
 0x19b   :  { %1896 = vperm.xlu1 %2123, %v1683_v28   ;;  %1686 = vst [vmem:[#allocation1 + $0x1] ss:$4 sm:$0xff] %v1233_v15  ;;  %v322_v15 = vmul.f32 0.020408163, %v2679_v41  ;;  %v2011_v28 = vperm.slane %v1813_v27, %v2783_v54  ;;  %v2015_v41 = vperm.slane %v1819_v33, %v2804_v20 }
 0x19c   :  { %1687 = vst [vmem:[#allocation1 + $0x2] ss:$4 sm:$0xff] %v1237_v50  ;;  %v1816_v50 = vpop.permute.xlu1 %1815 }
 0x19d   :  { %v1674_v52 = vld.sshfl [vmem:[#allocation1 + $0x20] sm:$0xff pattern:$0x73625140]  ;;  %1688 = vst [vmem:[#allocation1 + $0x3] ss:$4 sm:$0xff] %v1241_v35  ;;  %v2012_v34 = vsel %vm1962_vm6, %v2011_v28, %v2010_v21  ;;  %v1293_v35 = vperm.slane %v322_v15, %v2354_v36  ;;  %v1301_v32 = vperm.slane %v322_v15, %v2358_v38 }
 0x19e   :  { %1893 = vperm.xlu2 %2124, %v1674_v52   ;;  %1679 = vst [vmem:[#allocation1 + $0x20] ss:$4 sm:$0xff] %v1213_v44  ;;  %v2013_v44 = vperm.slane %v1816_v50, %v2787_v9 }
 0x19f   :  { %1680 = vst [vmem:[#allocation1 + $0x21] ss:$4 sm:$0xff] %v1217_v46  ;;  %v1297_v46 = vperm.slane %v322_v15, %v2356_v37 }
 0x1a0   :  { %1681 = vst [vmem:[#allocation1 + $0x22] ss:$4 sm:$0xff] %v1221_v8  ;;  %v2014_v8 = vsel %vm1966_vm7, %v2013_v44, %v2012_v34  ;;  %v326_v34 = vmul.f32 0.020408163, %v2724_v11 }
 0x1a1   :  { %1682 = vst [vmem:[#allocation1 + $0x23] ss:$4 sm:$0xff] %v1225_v53  ;;  %v1305_v53 = vperm.slane %v322_v15, %v2363_v40  ;;  %v2016_v55 = vsel %vm1970_vm8, %v2015_v41, %v2014_v8 }
 0x1a2   :  { %v1822_v56 = vpop.permute.xlu2 %1821  ;;  %v1357_v41 = vperm.slane %v326_v34, %v2354_v36  ;;  %v1361_v8 = vperm.slane %v326_v34, %v2356_v37 }
 0x1a3   :  { %v2017_v6 = vperm.slane %v1822_v56, %v2800_v1 }
 0x1a4   :  { %v1693_v25 = vld.sshfl [vmem:[#allocation1] sm:$0xff pattern:$0x73625140] }
 0x1a5   :  { %1695 = vst [vmem:[#allocation1] ss:$4 sm:$0xff] %v1261_v42  ;;  %v324_v42 = vmul.f32 0.020408163, %v2719_v10  ;;  %v2018_v0 = vsel %vm1974_vm9, %v2017_v6, %v2016_v55  ;;  %v1365_v55 = vperm.slane %v326_v34, %v2358_v38 }
 0x1a6   :  { %1902 = vperm.xlu2 %2124, %v1693_v25   ;;  %1696 = vst [vmem:[#allocation1 + $0x1] ss:$4 sm:$0xff] %v1265_v31  ;;  %v1828_v31 = vpop.permute.xlu0 %1827  ;;  %v1825_v25 = vpop.permute.xlu1 %1824 }
 0x1a7   :  { %1697 = vst [vmem:[#allocation1 + $0x2] ss:$4 sm:$0xff] %v1269_v17  ;;  %v323_v17 = vmul.f32 0.020408163, %v2712_v12  ;;  %v1325_v22 = vperm.slane %v324_v42, %v2354_v36  ;;  %v1329_v21 = vperm.slane %v324_v42, %v2356_v37  ;;  %v2021_v10 = vperm.slane %v1828_v31, %v2828_v29 }
 0x1a8   :  { %1698 = vst [vmem:[#allocation1 + $0x3] ss:$4 sm:$0xff] %v1273_v60  ;;  %v1684_v19 = vld.sshfl [vmem:[#allocation1 + $0x20] sm:$0xff pattern:$0x73625140]  ;;  %v2019_v60 = vperm.slane %v1825_v25, %v2816_v24  ;;  %v1337_v27 = vperm.slane %v324_v42, %v2363_v40 }
 0x1a9   :  { %1899 = vperm.xlu0 %2125, %v1684_v19   ;;  %1689 = vst [vmem:[#allocation1 + $0x20] ss:$4 sm:$0xff] %v1245_v18  ;;  %v1313_v15 = vperm.slane %v323_v17, %v2356_v37  ;;  %v1317_v33 = vperm.slane %v323_v17, %v2358_v38  ;;  %v1321_v50 = vperm.slane %v323_v17, %v2363_v40 }
 0x1aa   :  { %1690 = vst [vmem:[#allocation1 + $0x21] ss:$4 sm:$0xff] %v1249_v59  ;;  %v1333_v59 = vperm.slane %v324_v42, %v2358_v38  ;;  %v2020_v19 = vsel %vm1978_vm10, %v2019_v60, %v2018_v0  ;;  %v328_v0 = vmul.f32 0.020408163, %v2710_v30 }
 0x1ab   :  { %1691 = vst [vmem:[#allocation1 + $0x22] ss:$4 sm:$0xff] %v1253_v26  ;;  %v1831_v26 = vpop.permute.xlu2 %1830  ;;  %v2022_v12 = vsel %vm1982_vm11, %v2021_v10, %v2020_v19 }
 0x1ac   :  { %1692 = vst [vmem:[#allocation1 + $0x23] ss:$4 sm:$0xff] %v1257_v23  ;;  %v1309_v23 = vperm.slane %v323_v17, %v2354_v36  ;;  %v1389_v10 = vperm.slane %v328_v0, %v2354_v36  ;;  %v1393_v19 = vperm.slane %v328_v0, %v2356_v37 }
 0x1ae   :  { %v1837_v48 = vpop.permute.xlu0 %1836  ;;  %v1834_v44 = vpop.permute.xlu1 %1833 }
 0x1af   :  { %v1703_v52 = vld.sshfl [vmem:[#allocation1] sm:$0xff pattern:$0x73625140]  ;;  %v2027_v11 = vperm.slane %v1837_v48, %v2853_v47 }
 0x1b0   :  { %1705 = vst [vmem:[#allocation1] ss:$4 sm:$0xff] %v1293_v35  ;;  %v2023_v35 = vperm.slane %v1831_v26, %v2825_v2  ;;  %v1401_v26 = vperm.slane %v328_v0, %v2363_v40 }
 0x1b1   :  { %1908 = vperm.xlu0 %2125, %v1703_v52   ;;  %1706 = vst [vmem:[#allocation1 + $0x1] ss:$4 sm:$0xff] %v1297_v46  ;;  %v325_v52 = vmul.f32 0.020408163, %v2692_v43 }
 0x1b2   :  { %1707 = vst [vmem:[#allocation1 + $0x2] ss:$4 sm:$0xff] %v1301_v32  ;;  %v2024_v46 = vsel %vm1986_vm12, %v2023_v35, %v2022_v12  ;;  %v2025_v32 = vperm.slane %v1834_v44, %v2841_v45 }
 0x1b3   :  { %v1694_v14 = vld.sshfl [vmem:[#allocation1 + $0x20] sm:$0xff pattern:$0x73625140]  ;;  %1708 = vst [vmem:[#allocation1 + $0x3] ss:$4 sm:$0xff] %v1305_v53  ;;  %v1349_v31 = vperm.slane %v325_v52, %v2358_v38  ;;  %v1353_v25 = vperm.slane %v325_v52, %v2363_v40 }
 0x1b4   :  { %1905 = vperm.xlu1 %2123, %v1694_v14   ;;  %1699 = vst [vmem:[#allocation1 + $0x20] ss:$4 sm:$0xff] %v1277_v4  ;;  %v1840_v4 = vpop.permute.xlu2 %1839  ;;  %v2026_v56 = vsel %vm1990_vm13, %v2025_v32, %v2024_v46  ;;  %v1341_v14 = vperm.slane %v325_v52, %v2354_v36 }
 0x1b5   :  { %1700 = vst [vmem:[#allocation1 + $0x21] ss:$4 sm:$0xff] %v1281_v58  ;;  %v1369_v58 = vperm.slane %v326_v34, %v2363_v40  ;;  %v2028_v43 = vsel %vm1994_vm14, %v2027_v11, %v2026_v56  ;;  %v2029_v42 = vperm.slane %v1840_v4, %v2850_v16 }
 0x1b6   :  { %1701 = vst [vmem:[#allocation1 + $0x22] ss:$4 sm:$0xff] %v1285_v3  ;;  %v1345_v3 = vperm.slane %v325_v52, %v2356_v37  ;;  %v1843_v17 = vpop.permute.xlu1 %1842 }
 0x1b7   :  { %1702 = vst [vmem:[#allocation1 + $0x23] ss:$4 sm:$0xff] %v1289_v63 }
 0x1b8   :  { %v1846_v6 = vpop.permute.xlu0 %1845 }
 0x1b9   :  { %v2032_v60 = vperm.slane %v1846_v6, %v2745_v62 }
 0x1ba   :  { %v1713_v18 = vld.sshfl [vmem:[#allocation1] sm:$0xff pattern:$0x73625140] }
 0x1bb   :  { %1715 = vst [vmem:[#allocation1] ss:$4 sm:$0xff] %v1325_v22  ;;  %v2953_v22 = vsel %vm1998_vm15, %v2029_v42, %v2028_v43 }
 0x1bc   :  { %1914 = vperm.xlu1 %2123, %v1713_v18   ;;  %1716 = vst [vmem:[#allocation1 + $0x1] ss:$4 sm:$0xff] %v1329_v21  ;;  %v2031_v21 = vperm.slane %v1843_v17, %v2735_v61 }
 0x1bd   :  { %1717 = vst [vmem:[#allocation1 + $0x2] ss:$4 sm:$0xff] %v1333_v59  ;;  %v327_v59 = vmul.f32 0.020408163, %v2730_v39 }
 0x1be   :  { %v1704_v28 = vld.sshfl [vmem:[#allocation1 + $0x20] sm:$0xff pattern:$0x73625140]  ;;  %1718 = vst [vmem:[#allocation1 + $0x3] ss:$4 sm:$0xff] %v1337_v27  ;;  %v2033_v18 = vsel %vm1942_vm1, %v2032_v60, %v2031_v21  ;;  %v1397_v27 = vperm.slane %v328_v0, %v2358_v38 }
 0x1bf   :  { %1911 = vperm.xlu2 %2124, %v1704_v28   ;;  %1709 = vst [vmem:[#allocation1 + $0x20] ss:$4 sm:$0xff] %v1309_v23  ;;  %v1373_v12 = vperm.slane %v327_v59, %v2354_v36  ;;  %v1377_v23 = vperm.slane %v327_v59, %v2356_v37  ;;  %v1381_v28 = vperm.slane %v327_v59, %v2358_v38 }
 0x1c0   :  { %1710 = vst [vmem:[#allocation1 + $0x21] ss:$4 sm:$0xff] %v1313_v15  ;;  %v1385_v39 = vperm.slane %v327_v59, %v2363_v40  ;;  %v1855_v32 = vpop.permute.xlu0 %1854 }
 0x1c1   :  { %1711 = vst [vmem:[#allocation1 + $0x22] ss:$4 sm:$0xff] %v1317_v33  ;;  %v329_v33 = vmul.f32 0.020408163, %v2737_v51 }
 0x1c2   :  { %1712 = vst [vmem:[#allocation1 + $0x23] ss:$4 sm:$0xff] %v1321_v50  ;;  %v1849_v50 = vpop.permute.xlu2 %1848 }
 0x1c3   :  { %v1405_v35 = vperm.slane %v329_v33, %v2354_v36  ;;  %v1852_v48 = vpop.permute.xlu1 %1851  ;;  %v1409_v44 = vperm.slane %v329_v33, %v2356_v37  ;;  %v1413_v52 = vperm.slane %v329_v33, %v2358_v38  ;;  %v2034_v36 = vperm.slane %v1849_v50, %v2752_v57 }
 0x1c4   :  { %v2036_v11 = vperm.slane %v1852_v48, %v2756_v13 }
 0x1c5   :  { %v1723_v53 = vld.sshfl [vmem:[#allocation1] sm:$0xff pattern:$0x73625140] }
 0x1c6   :  { %1725 = vst [vmem:[#allocation1] ss:$4 sm:$0xff] %v1357_v41  ;;  %v1417_v41 = vperm.slane %v329_v33, %v2363_v40  ;;  %v2038_v40 = vperm.slane %v1855_v32, %v2768_v7 }
 0x1c7   :  { %1920 = vperm.xlu2 %2124, %v1723_v53   ;;  %1726 = vst [vmem:[#allocation1 + $0x1] ss:$4 sm:$0xff] %v1361_v8 }
 0x1c8   :  { %1727 = vst [vmem:[#allocation1 + $0x2] ss:$4 sm:$0xff] %v1365_v55  ;;  %v2035_v55 = vsel %vm1946_vm2, %v2034_v36, %v2033_v18 }
 0x1c9   :  { %1728 = vst [vmem:[#allocation1 + $0x3] ss:$4 sm:$0xff] %v1369_v58  ;;  %v1714_v63 = vld.sshfl [vmem:[#allocation1 + $0x20] sm:$0xff pattern:$0x73625140]  ;;  %v2037_v38 = vsel %vm1950_vm3, %v2036_v11, %v2035_v55 }
 0x1ca   :  { %1917 = vperm.xlu0 %2125, %v1714_v63   ;;  %1719 = vst [vmem:[#allocation1 + $0x20] ss:$4 sm:$0xff] %v1341_v14  ;;  %v1858_v51 = vpop.permute.xlu2 %1857  ;;  %v2039_v56 = vsel %vm1954_vm4, %v2038_v40, %v2037_v38 }
 0x1cb   :  { %1720 = vst [vmem:[#allocation1 + $0x21] ss:$4 sm:$0xff] %v1345_v3  ;;  %v1861_v8 = vpop.permute.xlu1 %1860  ;;  %v2040_v43 = vperm.slane %v1858_v51, %v2777_v49 }
 0x1cc   :  { %1721 = vst [vmem:[#allocation1 + $0x22] ss:$4 sm:$0xff] %v1349_v31  ;;  %v2042_v58 = vperm.slane %v1861_v8, %v2783_v54 }
 0x1cd   :  { %1722 = vst [vmem:[#allocation1 + $0x23] ss:$4 sm:$0xff] %v1353_v25  ;;  %v2041_v3 = vsel %vm1958_vm5, %v2040_v43, %v2039_v56 }
 0x1ce   :  { %v2043_v63 = vsel %vm1962_vm6, %v2042_v58, %v2041_v3 }
 0x1d0   :  { %v1733_v30 = vld.sshfl [vmem:[#allocation1] sm:$0xff pattern:$0x73625140] }
 0x1d1   :  { %1735 = vst [vmem:[#allocation1] ss:$4 sm:$0xff] %v1389_v10 }
 0x1d2   :  { %1926 = vperm.xlu0 %2125, %v1733_v30   ;;  %1736 = vst [vmem:[#allocation1 + $0x1] ss:$4 sm:$0xff] %v1393_v19  ;;  %v1867_v4 = vpop.permute.xlu2 %1866 }
 0x1d3   :  { %1737 = vst [vmem:[#allocation1 + $0x2] ss:$4 sm:$0xff] %v1397_v27  ;;  %v2046_v17 = vperm.slane %v1867_v4, %v2804_v20 }
 0x1d4   :  { %v1724_v15 = vld.sshfl [vmem:[#allocation1 + $0x20] sm:$0xff pattern:$0x73625140]  ;;  %1738 = vst [vmem:[#allocation1 + $0x3] ss:$4 sm:$0xff] %v1401_v26 }
 0x1d5   :  { %1923 = vperm.xlu1 %2123, %v1724_v15   ;;  %1729 = vst [vmem:[#allocation1 + $0x20] ss:$4 sm:$0xff] %v1373_v12 }
 0x1d6   :  { %1730 = vst [vmem:[#allocation1 + $0x21] ss:$4 sm:$0xff] %v1377_v23 }
 0x1d7   :  { %1731 = vst [vmem:[#allocation1 + $0x22] ss:$4 sm:$0xff] %v1381_v28 }
 0x1d8   :  { %1732 = vst [vmem:[#allocation1 + $0x23] ss:$4 sm:$0xff] %v1385_v39 }
 0x1d9   :  { %v1864_v37 = vpop.permute.xlu0 %1863 }
 0x1da   :  { %v2044_v6 = vperm.slane %v1864_v37, %v2787_v9  ;;  %v1876_v25 = vpop.permute.xlu2 %1875 }
 0x1db   :  { %v1743_v34 = vld.sshfl [vmem:[#allocation1] sm:$0xff pattern:$0x73625140]  ;;  %v2052_v27 = vperm.slane %v1876_v25, %v2828_v29 }
 0x1dc   :  { %v2045_v31 = vsel %vm1966_vm7, %v2044_v6, %v2043_v63 }
 0x1dd   :  { %1932 = vperm.xlu1 %2123, %v1743_v34   ;;  %v2047_v60 = vsel %vm1970_vm8, %v2046_v17, %v2045_v31 }
 0x1df   :  { %v1734_v46 = vld.sshfl [vmem:[#allocation1 + $0x20] sm:$0xff pattern:$0x73625140] }
 0x1e0   :  { %1929 = vperm.xlu2 %2124, %v1734_v46   ;;  %1739 = vst [vmem:[#allocation1 + $0x20] ss:$4 sm:$0xff] %v1405_v35 }
 0x1e1   :  { %1740 = vst [vmem:[#allocation1 + $0x21] ss:$4 sm:$0xff] %v1409_v44  ;;  %v1873_v42 = vpop.permute.xlu0 %1872 }
 0x1e2   :  { %1741 = vst [vmem:[#allocation1 + $0x22] ss:$4 sm:$0xff] %v1413_v52  ;;  %v2050_v10 = vperm.slane %v1873_v42, %v2816_v24  ;;  %v1885_v12 = vpop.permute.xlu2 %1884 }
 0x1e3   :  { %1742 = vst [vmem:[#allocation1 + $0x23] ss:$4 sm:$0xff] %v1417_v41  ;;  %v2058_v39 = vperm.slane %v1885_v12, %v2853_v47 }
 0x1e4   :  { %v1870_v14 = vpop.permute.xlu1 %1869 }
 0x1e5   :  { %v2048_v0 = vperm.slane %v1870_v14, %v2800_v1 }
 0x1e7   :  { %v2049_v21 = vsel %vm1974_vm9, %v2048_v0, %v2047_v60 }
 0x1e8   :  { %v2051_v19 = vsel %vm1978_vm10, %v2050_v10, %v2049_v21 }
 0x1e9   :  { %v2053_v23 = vsel %vm1982_vm11, %v2052_v27, %v2051_v19 }
 0x1ea   :  { %v1744_v53 = vld.sshfl [vmem:[#allocation1 + $0x20] sm:$0xff pattern:$0x73625140] }
 0x1eb   :  { %1935 = vperm.xlu0 %2125, %v1744_v53  }
 0x1ec   :  { %v1879_v18 = vpop.permute.xlu1 %1878 }
 0x1ed   :  { %v2054_v30 = vperm.slane %v1879_v18, %v2825_v2 }
 0x1ef   :  { %v2055_v15 = vsel %vm1986_vm12, %v2054_v30, %v2053_v23 }
 0x1f8   :  { %v1894_v52 = vpop.permute.xlu2 %1893 }
 0x1f9   :  { %v2063_v36 = vperm.slane %v1894_v52, %v2745_v62 }
 0x1fa   :  { %v1882_v59 = vpop.permute.xlu0 %1881 }
 0x1fb   :  { %v2056_v26 = vperm.slane %v1882_v59, %v2841_v45 }
 0x1fd   :  { %v2057_v28 = vsel %vm1990_vm13, %v2056_v26, %v2055_v15 }
 0x1fe   :  { %v2059_v34 = vsel %vm1994_vm14, %v2058_v39, %v2057_v28 }
 0x200   :  { %v1903_v51 = vpop.permute.xlu2 %1902 }
 0x201   :  { %v2069_v58 = vperm.slane %v1903_v51, %v2768_v7 }
 0x202   :  { %v1891_v44 = vpop.permute.xlu0 %1890 }
 0x203   :  { %v2062_v8 = vperm.slane %v1891_v44, %v2735_v61 }
 0x205   :  { %v1888_v33 = vpop.permute.xlu1 %1887  ;;  %v2064_v55 = vsel %vm1942_vm1, %v2063_v36, %v2062_v8  ;;  %vm2097_vm1 = vcmask 1041408  }
 0x206   :  { %v2060_v50 = vperm.slane %v1888_v33, %v2850_v16 }
 0x208   :  { %v2061_v35 = vsel %vm1998_vm15, %v2060_v50, %v2059_v34 }
 0x209   :  { %v2094_v48 = vsel %vm2093_vm0, %v2061_v35, %v2866_v5 }
 0x20d   :  { %v1897_v46 = vpop.permute.xlu1 %1896 }
 0x20e   :  { %v2065_v11 = vperm.slane %v1897_v46, %v2752_v57 }
 0x210   :  { %v2066_v5 = vsel %vm1946_vm2, %v2065_v11, %v2064_v55 }
 0x219   :  { %v1912_v4 = vpop.permute.xlu2 %1911 }
 0x21a   :  { %v2075_v63 = vperm.slane %v1912_v4, %v2787_v9 }
 0x21b   :  { %v1900_v41 = vpop.permute.xlu0 %1899 }
 0x21c   :  { %v2067_v37 = vperm.slane %v1900_v41, %v2756_v13 }
 0x21e   :  { %v2068_v40 = vsel %vm1950_vm3, %v2067_v37, %v2066_v5 }
 0x21f   :  { %v2070_v43 = vsel %vm1954_vm4, %v2069_v58, %v2068_v40 }
 0x221   :  { %v1921_v6 = vpop.permute.xlu2 %1920 }
 0x222   :  { %v2081_v0 = vperm.slane %v1921_v6, %v2816_v24 }
 0x223   :  { %v1909_v53 = vpop.permute.xlu0 %1908 }
 0x224   :  { %v2073_v57 = vperm.slane %v1909_v53, %v2783_v54 }
 0x226   :  { %v1906_v32 = vpop.permute.xlu1 %1905 }
 0x227   :  { %v2071_v56 = vperm.slane %v1906_v32, %v2777_v49 }
 0x229   :  { %v2072_v62 = vsel %vm1958_vm5, %v2071_v56, %v2070_v43 }
 0x22a   :  { %v2074_v14 = vsel %vm1962_vm6, %v2073_v57, %v2072_v62 }
 0x22b   :  { %v2076_v49 = vsel %vm1966_vm7, %v2075_v63, %v2074_v14 }
 0x22e   :  { %v1915_v38 = vpop.permute.xlu1 %1914 }
 0x22f   :  { %v2077_v3 = vperm.slane %v1915_v38, %v2804_v20 }
 0x231   :  { %v2078_v7 = vsel %vm1970_vm8, %v2077_v3, %v2076_v49 }
 0x23c   :  { %v1918_v61 = vpop.permute.xlu0 %1917 }
 0x23d   :  { %v2079_v42 = vperm.slane %v1918_v61, %v2800_v1  ;;  %v1930_v1 = vpop.permute.xlu2 %1929 }
 0x23e   :  { %v2087_v10 = vperm.slane %v1930_v1, %v2841_v45 }
 0x23f   :  { %v2080_v31 = vsel %vm1974_vm9, %v2079_v42, %v2078_v7 }
 0x240   :  { %v2082_v17 = vsel %vm1978_vm10, %v2081_v0, %v2080_v31 }
 0x244   :  { %v1927_v25 = vpop.permute.xlu0 %1926 }
 0x245   :  { %v2085_v20 = vperm.slane %v1927_v25, %v2825_v2 }
 0x247   :  { %v1924_v13 = vpop.permute.xlu1 %1923 }
 0x248   :  { %v2083_v54 = vperm.slane %v1924_v13, %v2828_v29 }
 0x24a   :  { %v2084_v9 = vsel %vm1982_vm11, %v2083_v54, %v2082_v17 }
 0x24b   :  { %v2086_v21 = vsel %vm1986_vm12, %v2085_v20, %v2084_v9 }
 0x24c   :  { %v2088_v29 = vsel %vm1990_vm13, %v2087_v10, %v2086_v21 }
 0x24f   :  { %v1933_v60 = vpop.permute.xlu1 %1932 }
 0x250   :  { %v2089_v18 = vperm.slane %v1933_v60, %v2853_v47 }
 0x252   :  { %v2090_v24 = vsel %vm1994_vm14, %v2089_v18, %v2088_v29 }
 0x25d   :  { %v1936_v59 = vpop.permute.xlu0 %1935 }
 0x25e   :  { %v2091_v19 = vperm.slane %v1936_v59, %v2850_v16 }
 0x260   :  { %v2092_v30 = vsel %vm1998_vm15, %v2091_v19, %v2090_v24 }
 0x261   :  { %v2095_v2 = vsel %vm2093_vm0, %v2092_v30, %v2953_v22 }
 0x262   :  { %v2096_v45 = vrot.slane %v2095_v2, 6 }
 0x264   :  { %v2098_v47 = vsel %vm2097_vm1, %v2094_v48, %v2096_v45 }
 0x265   :  { %2100 = vst [vmem:[#allocation2] sm:$0xf] %v2098_v47 }
 0x266   :  { %2111 = dma.vmem_to_hbm [thread:$0]  %s2107_s18, 64, %s2109_s21, [#allocation3]  }
 0x267   :  { %2150 = dma.done.wait [#allocation3], 64  }
 0x268   :  { %2151 = vsyncadd [#allocation3], 4294967232 }
 0x269   :  { %2116 = vsyncpa [#allocation3], 1 }

</bundles_post_ra>
